<compile_context>
chip_gen: v6e
topology: v6e:2x2x1
jax: 0.10.0
libtpu: 0.0.40
codegen_flags: <defaults>
</compile_context>

<pallas_src>
import numpy as np
import jax
import jax.numpy as jnp
from jax import lax
from jax.experimental import pallas as pl
from jax.experimental.pallas import tpu as pltpu

# ------------------------- static hyper-parameters -------------------------
MIN_THETA_LGN, MAX_THETA_LGN = 0.0, 1.0   # LGN PiecewiseSigmoid
MIN_THETA_V1, MAX_THETA_V1 = 0.0, 1.0     # ReducedLissom PiecewiseSigmoid
AFF_STRENGTH = 1.0
EXC_STRENGTH = 1.0
INH_STRENGTH = 1.0
SETTLING_STEPS = 3

WEIGHT_DTYPE = jnp.bfloat16   # weight storage dtype (f32 accumulation on MXU)

_MIB = 1024 * 1024
_VMEM_BUDGET = 56 * _MIB      # conservative: fits v7x's 64 MiB per-core VMEM


def _piecewise_sigmoid(x, lo, hi):
    # torch's PiecewiseSigmoid masks <=lo to 0 and >=hi to 1; identical to clip.
    if lo == 0.0 and hi == 1.0:            # fold the affine map at trace time
        return jnp.clip(x, 0.0, 1.0)
    inv = 1.0 / (hi - lo)                  # Python constant -> no vector divide
    return jnp.clip((x - lo) * inv, 0.0, 1.0)


# ------------------------------- kernel ------------------------------------
def lissom_kernel(x_ref, wonoff_ref, waff_ref, wlat_ref, out_ref):
    lgn_f = waff_ref.shape[0]

    # --- LGN ON + OFF channels: one fused matmul, then split / squash / add ---
    x = x_ref[...].astype(wonoff_ref.dtype)
    onoff = jnp.dot(x, wonoff_ref[...], preferred_element_type=jnp.float32)
    on_out = _piecewise_sigmoid(onoff[:, :lgn_f], MIN_THETA_LGN, MAX_THETA_LGN)
    off_out = _piecewise_sigmoid(onoff[:, lgn_f:], MIN_THETA_LGN, MAX_THETA_LGN)
    lgn = on_out + off_out

    # --- V1 (ReducedLissom): afferent (aff_strength folded into waff) ---
    afferent = jnp.dot(lgn.astype(waff_ref.dtype), waff_ref[...],
                       preferred_element_type=jnp.float32)
    act = _piecewise_sigmoid(afferent, MIN_THETA_V1, MAX_THETA_V1)

    # --- settling loop: single combined lateral matmul per step ---
    # Static trip count -> fully unrolled so the LLO scheduler can overlap the
    # MXU push of step s+1 with the clamp/add epilogue of step s.
    for _ in range(SETTLING_STEPS):
        lat = jnp.dot(act.astype(wlat_ref.dtype), wlat_ref[...],
                      preferred_element_type=jnp.float32)
        act = _piecewise_sigmoid(afferent + lat, MIN_THETA_V1, MAX_THETA_V1)

    out_ref[...] = act.astype(out_ref.dtype)


# ------------------------------ wrappers ------------------------------------
def prepare_lissom_weights(w_on, w_off, w_aff, w_exc, w_inh,
                           dtype=WEIGHT_DTYPE, lat_dtype=None):
    """One-time weight prep (do NOT call per forward).

    Inputs are PyTorch-convention (out_features, in_features) matrices.
    Returns:
      w_onoff_t : (in_f,  2*lgn_f)  [W_on ; W_off] transposed
      w_aff_t   : (lgn_f, v1_f)     aff_strength folded in
      w_lat_t   : (v1_f,  v1_f)     exc_strength*W_exc - inh_strength*W_inh

    Notes:
      * On v5e (no bf16 VPU, 128 MiB VMEM) passing dtype=jnp.float32 is often
        the better trade.
      * lat_dtype overrides the lateral-fold storage dtype (keep it f32 if the
        bf16 exc-inh cancellation matters at production map sizes).
    """
    if lat_dtype is None:
        lat_dtype = dtype
    w_onoff_t = jnp.concatenate([w_on, w_off], axis=0).T.astype(dtype)
    w_aff_t = (AFF_STRENGTH * w_aff).T.astype(dtype)
    w_lat_t = (EXC_STRENGTH * w_exc - INH_STRENGTH * w_inh).T.astype(lat_dtype)
    return w_onoff_t, w_aff_t, w_lat_t


def _choose_tile_b(B):
    """Largest MXU-friendly batch tile that divides B; else one whole-batch tile."""
    for cand in (512, 256, 128):
        if B % cand == 0:
            return cand
    return B


def _build_call(*, B, in_f, lgn_f, v1_f, tile_b, out_dtype, weight_buffers,
                parallel_batch, vmem_limit_bytes, cost):
    wkw = {}
    if weight_buffers is not None:
        # Weights use a constant index_map -> single-buffer them.
        wkw = dict(pipeline_mode=pl.Buffered(weight_buffers))
    return pl.pallas_call(
        lissom_kernel,
        out_shape=jax.ShapeDtypeStruct((B, v1_f), out_dtype),
        grid=(B // tile_b,),
        in_specs=[
            # x: pipelined per batch tile
            pl.BlockSpec((tile_b, in_f), lambda i: (i, 0)),
            # weights: same block every grid step -> stay VMEM resident
            pl.BlockSpec((in_f, 2 * lgn_f), lambda i: (0, 0), **wkw),
            pl.BlockSpec((lgn_f, v1_f), lambda i: (0, 0), **wkw),
            pl.BlockSpec((v1_f, v1_f), lambda i: (0, 0), **wkw),
        ],
        out_specs=pl.BlockSpec((tile_b, v1_f), lambda i: (i, 0)),
        compiler_params=pltpu.CompilerParams(
            dimension_semantics=(("parallel",) if parallel_batch
                                 else ("arbitrary",)),
            vmem_limit_bytes=vmem_limit_bytes,
        ),
        cost_estimate=cost,
    )


def lissom_forward(x, w_onoff_t, w_aff_t, w_lat_t, *, tile_b=None,
                   out_dtype=jnp.float32):
    """x: (B, in_features) f32; prepared weights from prepare_lissom_weights."""
    B, in_f = x.shape
    lgn_f = w_onoff_t.shape[1] // 2
    v1_f = w_aff_t.shape[1]
    assert w_onoff_t.shape == (in_f, 2 * lgn_f)
    assert w_aff_t.shape == (lgn_f, v1_f)
    assert w_lat_t.shape == (v1_f, v1_f)

    if tile_b is None:
        tile_b = _choose_tile_b(B)
    assert B % tile_b == 0, "batch must be divisible by the batch tile"
    if tile_b != B:
        # Partial-batch blocks must respect the (8,128) tiling rule; 16 keeps
        # bf16 operand vregs fully packed.
        assert tile_b % 16 == 0, "partial batch tiles must be a multiple of 16"

    grid_b = B // tile_b
    # Megacore split only pays off when each core still gets an MXU-filling M.
    parallel_batch = (grid_b > 1) and (tile_b >= 128)

    # ---- VMEM budget check (keeps realistic map sizes from silently OOMing) ----
    w_nbytes = (w_onoff_t.size * w_onoff_t.dtype.itemsize
                + w_aff_t.size * w_aff_t.dtype.itemsize
                + w_lat_t.size * w_lat_t.dtype.itemsize)
    out_itemsize = np.dtype(out_dtype).itemsize
    io_nbytes = 2 * tile_b * (in_f * x.dtype.itemsize + v1_f * out_itemsize)
    interm_nbytes = 4 * tile_b * (2 * lgn_f + 3 * v1_f)        # f32 temporaries
    weight_buffers = 1                                         # grid-invariant
    est_vmem = weight_buffers * w_nbytes + io_nbytes + interm_nbytes
    assert est_vmem <= _VMEM_BUDGET, (
        f"estimated VMEM footprint {est_vmem / _MIB:.1f} MiB exceeds the "
        f"conservative {_VMEM_BUDGET // _MIB} MiB budget (v7x has 64 MiB/TC); "
        "shrink the map sizes or tile the lateral matmul.")
    # TODO(synk): add an N-tiled settling matmul (extra 'arbitrary' grid axis +
    # f32 accumulator) for v1 maps whose W_lat no longer fits v7x VMEM.

    vmem_limit = None
    if est_vmem > 12 * _MIB:   # above comfortable default scoped-VMEM limits
        vmem_limit = min(int(est_vmem * 1.5) + 2 * _MIB, 64 * _MIB)

    # ---- advisory cost estimate for XLA's scheduler ----
    flops = 2 * B * (in_f * 2 * lgn_f + lgn_f * v1_f
                     + SETTLING_STEPS * v1_f * v1_f)
    bytes_accessed = (x.size * x.dtype.itemsize
                      + B * v1_f * out_itemsize + w_nbytes)
    cost = pl.CostEstimate(flops=flops, transcendentals=0,
                           bytes_accessed=bytes_accessed)

    common = dict(B=B, in_f=in_f, lgn_f=lgn_f, v1_f=v1_f, tile_b=tile_b,
                  out_dtype=out_dtype, parallel_batch=parallel_batch,
                  vmem_limit_bytes=vmem_limit, cost=cost)
    args = (x, w_onoff_t, w_aff_t, w_lat_t)
    try:
        return _build_call(weight_buffers=weight_buffers, **common)(*args)
    except Exception:
        # Fallback if this jax/Mosaic build rejects single-buffered BlockSpecs:
        # default double-buffered pipeline (correct, slightly more VMEM).
        return _build_call(weight_buffers=None, **common)(*args)


# ----------------------------- references -----------------------------------
def lissom_reference_f32(x, w_on, w_off, w_aff, w_exc, w_inh):
    """Full-precision reference matching the PyTorch module exactly."""
    hi = lax.Precision.HIGHEST
    on_out = _piecewise_sigmoid(jnp.dot(x, w_on.T, precision=hi),
                                MIN_THETA_LGN, MAX_THETA_LGN)
    off_out = _piecewise_sigmoid(jnp.dot(x, w_off.T, precision=hi),
                                 MIN_THETA_LGN, MAX_THETA_LGN)
    lgn = on_out + off_out
    aff = AFF_STRENGTH * jnp.dot(lgn, w_aff.T, precision=hi)
    act = _piecewise_sigmoid(aff, MIN_THETA_V1, MAX_THETA_V1)
    for _ in range(SETTLING_STEPS):
        exc = EXC_STRENGTH * jnp.dot(act, w_exc.T, precision=hi)
        inh = INH_STRENGTH * jnp.dot(act, w_inh.T, precision=hi)
        act = _piecewise_sigmoid(aff + exc - inh, MIN_THETA_V1, MAX_THETA_V1)
    return act


def lissom_reference_prepared(x, w_onoff_t, w_aff_t, w_lat_t):
    """Plain-JAX mirror of the kernel math (same reduced-precision operands)."""
    lgn_f = w_onoff_t.shape[1] // 2
    onoff = jnp.dot(x.astype(w_onoff_t.dtype), w_onoff_t,
                    preferred_element_type=jnp.float32)
    lgn = (_piecewise_sigmoid(onoff[:, :lgn_f], MIN_THETA_LGN, MAX_THETA_LGN)
           + _piecewise_sigmoid(onoff[:, lgn_f:], MIN_THETA_LGN, MAX_THETA_LGN))
    aff = jnp.dot(lgn.astype(w_aff_t.dtype), w_aff_t,
                  preferred_element_type=jnp.float32)
    act = _piecewise_sigmoid(aff, MIN_THETA_V1, MAX_THETA_V1)
    for _ in range(SETTLING_STEPS):
        lat = jnp.dot(act.astype(w_lat_t.dtype), w_lat_t,
                      preferred_element_type=jnp.float32)
        act = _piecewise_sigmoid(aff + lat, MIN_THETA_V1, MAX_THETA_V1)
    return act


if __name__ == "__main__":
    # Small shapes: retina 16x16 -> in_features=256, LGN 16x16 -> 256, V1 16x16 -> 256.
    B = 32
    retina = 16
    lgn_side = 16
    v1_side = 16
    in_features = retina * retina
    lgn_features = lgn_side * lgn_side
    v1_features = v1_side * v1_side

    key = jax.random.PRNGKey(0)
    kx, kon, koff, kaff, kexc, kinh = jax.random.split(key, 6)

    x = jax.random.uniform(kx, (B, in_features), dtype=jnp.float32)
    # Deterministic synthetic weights (PyTorch Linear (out, in) convention, bias=False,
    # mimicking pylissom's gaussian-normalized positive weights with small scale).
    scale = 1.0 / in_features
    w_on = scale * jax.random.uniform(kon, (lgn_features, in_features), dtype=jnp.float32)
    w_off = scale * jax.random.uniform(koff, (lgn_features, in_features), dtype=jnp.float32)
    w_aff = (1.0 / lgn_features) * jax.random.uniform(
        kaff, (v1_features, lgn_features), dtype=jnp.float32)
    w_exc = (1.0 / v1_features) * jax.random.uniform(
        kexc, (v1_features, v1_features), dtype=jnp.float32)
    w_inh = (1.0 / v1_features) * jax.random.uniform(
        kinh, (v1_features, v1_features), dtype=jnp.float32)

    # One-time weight prep (transpose / concat / fold / bf16 cast), outside hot path.
    w_onoff_t, w_aff_t, w_lat_t = prepare_lissom_weights(w_on, w_off, w_aff, w_exc, w_inh)
    w_onoff_t, w_aff_t, w_lat_t = jax.block_until_ready((w_onoff_t, w_aff_t, w_lat_t))

    # tile_b=None -> auto: for this tiny B=32 demo that is tile_b=B, grid=(1,).
    out = lissom_forward(x, w_onoff_t, w_aff_t, w_lat_t)
    out = jax.block_until_ready(out)
    assert out.shape == (B, v1_features)

    # Kernel math check: plain-JAX mirror with identical operand precision.
    ref_same = lissom_reference_prepared(x, w_onoff_t, w_aff_t, w_lat_t)
    assert jnp.max(jnp.abs(out - ref_same)) < 1e-3, "kernel mismatch vs matched-precision ref"

    # End-to-end fidelity check vs full-f32 HIGHEST-precision PyTorch semantics
    # (looser tolerance accounts for the bf16 weight storage).
    ref_f32 = lissom_reference_f32(x, w_on, w_off, w_aff, w_exc, w_inh)
    assert jnp.max(jnp.abs(out - ref_f32)) < 2e-2, "kernel mismatch vs f32 reference"

    print("KERNEL_OK")
</pallas_src>

<mosaic_0001>
module attributes {stable_mosaic.version = 11 : i64} {
  func.func @lissom_kernel(%arg0: i32, %arg1: memref<32x256xf32, #tpu.memory_space<vmem>>, %arg2: memref<256x512xbf16, #tpu.memory_space<vmem>>, %arg3: memref<256x256xbf16, #tpu.memory_space<vmem>>, %arg4: memref<256x256xbf16, #tpu.memory_space<vmem>>, %arg5: memref<32x256xf32, #tpu.memory_space<vmem>>) attributes {dimension_semantics = [#tpu.dimension_semantics<arbitrary>], iteration_bounds = array<i64: 1>, scalar_prefetch = 0 : i64, scratch_operands = 0 : i64, tpu.core_type = #tpu.core_type<tc>, window_params = [{transform_indices = @transform_0, window_bounds = array<i64: 32, 256>}, {pipeline_mode = #tpu.pipeline_mode<synchronous>, transform_indices = @transform_1, window_bounds = array<i64: 256, 512>}, {pipeline_mode = #tpu.pipeline_mode<synchronous>, transform_indices = @transform_2, window_bounds = array<i64: 256, 256>}, {pipeline_mode = #tpu.pipeline_mode<synchronous>, transform_indices = @transform_3, window_bounds = array<i64: 256, 256>}, {transform_indices = @transform_4, window_bounds = array<i64: 32, 256>}]} {
    %c0 = arith.constant 0 : index
    %c0_0 = arith.constant 0 : index
    %0 = vector.load %arg1[%c0, %c0_0] : memref<32x256xf32, #tpu.memory_space<vmem>>, vector<32x256xf32>
    %1 = arith.truncf %0 : vector<32x256xf32> to vector<32x256xbf16>
    %c0_1 = arith.constant 0 : index
    %c0_2 = arith.constant 0 : index
    %2 = vector.load %arg2[%c0_1, %c0_2] : memref<256x512xbf16, #tpu.memory_space<vmem>>, vector<256x512xbf16>
    %cst = arith.constant dense<0.000000e+00> : vector<32x512xf32>
    %3 = tpu.matmul %1, %2, %cst {dimension_numbers = #tpu.dot_dimension_numbers<[1], [0], [0], [1], [0, 0, 1, 1], [], []>} : vector<32x256xbf16>, vector<256x512xbf16>, vector<32x512xf32> -> vector<32x512xf32>
    %4 = vector.extract_strided_slice %3 {offsets = [0, 0], sizes = [32, 256], strides = [1, 1]} : vector<32x512xf32> to vector<32x256xf32>
    %cst_3 = arith.constant 0.000000e+00 : f32
    %cst_4 = arith.constant 1.000000e+00 : f32
    %5 = vector.broadcast %cst_3 : f32 to vector<32x256xf32>
    %6 = arith.maximumf %5, %4 : vector<32x256xf32>
    %7 = vector.broadcast %cst_4 : f32 to vector<32x256xf32>
    %8 = arith.minimumf %7, %6 : vector<32x256xf32>
    %9 = vector.extract_strided_slice %3 {offsets = [0, 256], sizes = [32, 256], strides = [1, 1]} : vector<32x512xf32> to vector<32x256xf32>
    %cst_5 = arith.constant 0.000000e+00 : f32
    %cst_6 = arith.constant 1.000000e+00 : f32
    %10 = vector.broadcast %cst_5 : f32 to vector<32x256xf32>
    %11 = arith.maximumf %10, %9 : vector<32x256xf32>
    %12 = vector.broadcast %cst_6 : f32 to vector<32x256xf32>
    %13 = arith.minimumf %12, %11 : vector<32x256xf32>
    %14 = arith.addf %8, %13 : vector<32x256xf32>
    %15 = arith.truncf %14 : vector<32x256xf32> to vector<32x256xbf16>
    %c0_7 = arith.constant 0 : index
    %c0_8 = arith.constant 0 : index
    %16 = vector.load %arg3[%c0_7, %c0_8] : memref<256x256xbf16, #tpu.memory_space<vmem>>, vector<256x256xbf16>
    %cst_9 = arith.constant dense<0.000000e+00> : vector<32x256xf32>
    %17 = tpu.matmul %15, %16, %cst_9 {dimension_numbers = #tpu.dot_dimension_numbers<[1], [0], [0], [1], [0, 0, 1, 1], [], []>} : vector<32x256xbf16>, vector<256x256xbf16>, vector<32x256xf32> -> vector<32x256xf32>
    %cst_10 = arith.constant 0.000000e+00 : f32
    %cst_11 = arith.constant 1.000000e+00 : f32
    %18 = vector.broadcast %cst_10 : f32 to vector<32x256xf32>
    %19 = arith.maximumf %18, %17 : vector<32x256xf32>
    %20 = vector.broadcast %cst_11 : f32 to vector<32x256xf32>
    %21 = arith.minimumf %20, %19 : vector<32x256xf32>
    %22 = arith.truncf %21 : vector<32x256xf32> to vector<32x256xbf16>
    %c0_12 = arith.constant 0 : index
    %c0_13 = arith.constant 0 : index
    %23 = vector.load %arg4[%c0_12, %c0_13] : memref<256x256xbf16, #tpu.memory_space<vmem>>, vector<256x256xbf16>
    %cst_14 = arith.constant dense<0.000000e+00> : vector<32x256xf32>
    %24 = tpu.matmul %22, %23, %cst_14 {dimension_numbers = #tpu.dot_dimension_numbers<[1], [0], [0], [1], [0, 0, 1, 1], [], []>} : vector<32x256xbf16>, vector<256x256xbf16>, vector<32x256xf32> -> vector<32x256xf32>
    %25 = arith.addf %17, %24 : vector<32x256xf32>
    %cst_15 = arith.constant 0.000000e+00 : f32
    %cst_16 = arith.constant 1.000000e+00 : f32
    %26 = vector.broadcast %cst_15 : f32 to vector<32x256xf32>
    %27 = arith.maximumf %26, %25 : vector<32x256xf32>
    %28 = vector.broadcast %cst_16 : f32 to vector<32x256xf32>
    %29 = arith.minimumf %28, %27 : vector<32x256xf32>
    %30 = arith.truncf %29 : vector<32x256xf32> to vector<32x256xbf16>
    %c0_17 = arith.constant 0 : index
    %c0_18 = arith.constant 0 : index
    %31 = vector.load %arg4[%c0_17, %c0_18] : memref<256x256xbf16, #tpu.memory_space<vmem>>, vector<256x256xbf16>
    %cst_19 = arith.constant dense<0.000000e+00> : vector<32x256xf32>
    %32 = tpu.matmul %30, %31, %cst_19 {dimension_numbers = #tpu.dot_dimension_numbers<[1], [0], [0], [1], [0, 0, 1, 1], [], []>} : vector<32x256xbf16>, vector<256x256xbf16>, vector<32x256xf32> -> vector<32x256xf32>
    %33 = arith.addf %17, %32 : vector<32x256xf32>
    %cst_20 = arith.constant 0.000000e+00 : f32
    %cst_21 = arith.constant 1.000000e+00 : f32
    %34 = vector.broadcast %cst_20 : f32 to vector<32x256xf32>
    %35 = arith.maximumf %34, %33 : vector<32x256xf32>
    %36 = vector.broadcast %cst_21 : f32 to vector<32x256xf32>
    %37 = arith.minimumf %36, %35 : vector<32x256xf32>
    %38 = arith.truncf %37 : vector<32x256xf32> to vector<32x256xbf16>
    %c0_22 = arith.constant 0 : index
    %c0_23 = arith.constant 0 : index
    %39 = vector.load %arg4[%c0_22, %c0_23] : memref<256x256xbf16, #tpu.memory_space<vmem>>, vector<256x256xbf16>
    %cst_24 = arith.constant dense<0.000000e+00> : vector<32x256xf32>
    %40 = tpu.matmul %38, %39, %cst_24 {dimension_numbers = #tpu.dot_dimension_numbers<[1], [0], [0], [1], [0, 0, 1, 1], [], []>} : vector<32x256xbf16>, vector<256x256xbf16>, vector<32x256xf32> -> vector<32x256xf32>
    %41 = arith.addf %17, %40 : vector<32x256xf32>
    %cst_25 = arith.constant 0.000000e+00 : f32
    %cst_26 = arith.constant 1.000000e+00 : f32
    %42 = vector.broadcast %cst_25 : f32 to vector<32x256xf32>
    %43 = arith.maximumf %42, %41 : vector<32x256xf32>
    %44 = vector.broadcast %cst_26 : f32 to vector<32x256xf32>
    %45 = arith.minimumf %44, %43 : vector<32x256xf32>
    %c0_27 = arith.constant 0 : index
    %c0_28 = arith.constant 0 : index
    %46 = vector.load %arg5[%c0_27, %c0_28] : memref<32x256xf32, #tpu.memory_space<vmem>>, vector<32x256xf32>
    tpu.vector_store %arg5[%c0_27, %c0_28], %45 {strides = array<i32>} : memref<32x256xf32, #tpu.memory_space<vmem>>, vector<32x256xf32>,
    return
  }
  func.func @transform_0(%arg0: i32) -> (i32, i32) {
    %c0_i32 = arith.constant 0 : i32
    %c0_i32_0 = arith.constant 0 : i32
    return %arg0, %c0_i32 : i32, i32
  }
  func.func @transform_1(%arg0: i32) -> (i32, i32) {
    %c0_i32 = arith.constant 0 : i32
    %c0_i32_0 = arith.constant 0 : i32
    %c0_i32_1 = arith.constant 0 : i32
    return %c0_i32, %c0_i32_0 : i32, i32
  }
  func.func @transform_2(%arg0: i32) -> (i32, i32) {
    %c0_i32 = arith.constant 0 : i32
    %c0_i32_0 = arith.constant 0 : i32
    %c0_i32_1 = arith.constant 0 : i32
    return %c0_i32, %c0_i32_0 : i32, i32
  }
  func.func @transform_3(%arg0: i32) -> (i32, i32) {
    %c0_i32 = arith.constant 0 : i32
    %c0_i32_0 = arith.constant 0 : i32
    %c0_i32_1 = arith.constant 0 : i32
    return %c0_i32, %c0_i32_0 : i32, i32
  }
  func.func @transform_4(%arg0: i32) -> (i32, i32) {
    %c0_i32 = arith.constant 0 : i32
    %c0_i32_0 = arith.constant 0 : i32
    return %arg0, %c0_i32 : i32, i32
  }
}

module attributes {stable_mosaic.version = 11 : i64} {
  func.func @lissom_kernel(%arg0: i32, %arg1: memref<32x256xf32, #tpu.memory_space<vmem>>, %arg2: memref<256x512xbf16, #tpu.memory_space<vmem>>, %arg3: memref<256x256xbf16, #tpu.memory_space<vmem>>, %arg4: memref<256x256xbf16, #tpu.memory_space<vmem>>, %arg5: memref<32x256xf32, #tpu.memory_space<vmem>>) attributes {dimension_semantics = [#tpu.dimension_semantics<arbitrary>], iteration_bounds = array<i64: 1>, scalar_prefetch = 0 : i64, scratch_operands = 0 : i64, tpu.core_type = #tpu.core_type<tc>, window_params = [{transform_indices = @transform_0, window_bounds = array<i64: 32, 256>}, {pipeline_mode = #tpu.pipeline_mode<synchronous>, transform_indices = @transform_1, window_bounds = array<i64: 256, 512>}, {pipeline_mode = #tpu.pipeline_mode<synchronous>, transform_indices = @transform_2, window_bounds = array<i64: 256, 256>}, {pipeline_mode = #tpu.pipeline_mode<synchronous>, transform_indices = @transform_3, window_bounds = array<i64: 256, 256>}, {transform_indices = @transform_4, window_bounds = array<i64: 32, 256>}]} {
    %c0 = arith.constant 0 : index
    %c0_0 = arith.constant 0 : index
    %0 = vector.load %arg1[%c0, %c0_0] : memref<32x256xf32, #tpu.memory_space<vmem>>, vector<32x256xf32>
    %1 = arith.truncf %0 : vector<32x256xf32> to vector<32x256xbf16>
    %c0_1 = arith.constant 0 : index
    %c0_2 = arith.constant 0 : index
    %2 = vector.load %arg2[%c0_1, %c0_2] : memref<256x512xbf16, #tpu.memory_space<vmem>>, vector<256x512xbf16>
    %cst = arith.constant dense<0.000000e+00> : vector<32x512xf32>
    %3 = tpu.matmul %1, %2, %cst {dimension_numbers = #tpu.dot_dimension_numbers<[1], [0], [0], [1], [0, 0, 1, 1], [], []>} : vector<32x256xbf16>, vector<256x512xbf16>, vector<32x512xf32> -> vector<32x512xf32>
    %4 = vector.extract_strided_slice %3 {offsets = [0, 0], sizes = [32, 256], strides = [1, 1]} : vector<32x512xf32> to vector<32x256xf32>
    %cst_3 = arith.constant 0.000000e+00 : f32
    %cst_4 = arith.constant 1.000000e+00 : f32
    %5 = vector.broadcast %cst_3 : f32 to vector<32x256xf32>
    %6 = arith.maximumf %5, %4 : vector<32x256xf32>
    %7 = vector.broadcast %cst_4 : f32 to vector<32x256xf32>
    %8 = arith.minimumf %7, %6 : vector<32x256xf32>
    %9 = vector.extract_strided_slice %3 {offsets = [0, 256], sizes = [32, 256], strides = [1, 1]} : vector<32x512xf32> to vector<32x256xf32>
    %cst_5 = arith.constant 0.000000e+00 : f32
    %cst_6 = arith.constant 1.000000e+00 : f32
    %10 = vector.broadcast %cst_5 : f32 to vector<32x256xf32>
    %11 = arith.maximumf %10, %9 : vector<32x256xf32>
    %12 = vector.broadcast %cst_6 : f32 to vector<32x256xf32>
    %13 = arith.minimumf %12, %11 : vector<32x256xf32>
    %14 = arith.addf %8, %13 : vector<32x256xf32>
    %15 = arith.truncf %14 : vector<32x256xf32> to vector<32x256xbf16>
    %c0_7 = arith.constant 0 : index
    %c0_8 = arith.constant 0 : index
    %16 = vector.load %arg3[%c0_7, %c0_8] : memref<256x256xbf16, #tpu.memory_space<vmem>>, vector<256x256xbf16>
    %cst_9 = arith.constant dense<0.000000e+00> : vector<32x256xf32>
    %17 = tpu.matmul %15, %16, %cst_9 {dimension_numbers = #tpu.dot_dimension_numbers<[1], [0], [0], [1], [0, 0, 1, 1], [], []>} : vector<32x256xbf16>, vector<256x256xbf16>, vector<32x256xf32> -> vector<32x256xf32>
    %cst_10 = arith.constant 0.000000e+00 : f32
    %cst_11 = arith.constant 1.000000e+00 : f32
    %18 = vector.broadcast %cst_10 : f32 to vector<32x256xf32>
    %19 = arith.maximumf %18, %17 : vector<32x256xf32>
    %20 = vector.broadcast %cst_11 : f32 to vector<32x256xf32>
    %21 = arith.minimumf %20, %19 : vector<32x256xf32>
    %22 = arith.truncf %21 : vector<32x256xf32> to vector<32x256xbf16>
    %c0_12 = arith.constant 0 : index
    %c0_13 = arith.constant 0 : index
    %23 = vector.load %arg4[%c0_12, %c0_13] : memref<256x256xbf16, #tpu.memory_space<vmem>>, vector<256x256xbf16>
    %cst_14 = arith.constant dense<0.000000e+00> : vector<32x256xf32>
    %24 = tpu.matmul %22, %23, %cst_14 {dimension_numbers = #tpu.dot_dimension_numbers<[1], [0], [0], [1], [0, 0, 1, 1], [], []>} : vector<32x256xbf16>, vector<256x256xbf16>, vector<32x256xf32> -> vector<32x256xf32>
    %25 = arith.addf %17, %24 : vector<32x256xf32>
    %cst_15 = arith.constant 0.000000e+00 : f32
    %cst_16 = arith.constant 1.000000e+00 : f32
    %26 = vector.broadcast %cst_15 : f32 to vector<32x256xf32>
    %27 = arith.maximumf %26, %25 : vector<32x256xf32>
    %28 = vector.broadcast %cst_16 : f32 to vector<32x256xf32>
    %29 = arith.minimumf %28, %27 : vector<32x256xf32>
    %30 = arith.truncf %29 : vector<32x256xf32> to vector<32x256xbf16>
    %c0_17 = arith.constant 0 : index
    %c0_18 = arith.constant 0 : index
    %31 = vector.load %arg4[%c0_17, %c0_18] : memref<256x256xbf16, #tpu.memory_space<vmem>>, vector<256x256xbf16>
    %cst_19 = arith.constant dense<0.000000e+00> : vector<32x256xf32>
    %32 = tpu.matmul %30, %31, %cst_19 {dimension_numbers = #tpu.dot_dimension_numbers<[1], [0], [0], [1], [0, 0, 1, 1], [], []>} : vector<32x256xbf16>, vector<256x256xbf16>, vector<32x256xf32> -> vector<32x256xf32>
    %33 = arith.addf %17, %32 : vector<32x256xf32>
    %cst_20 = arith.constant 0.000000e+00 : f32
    %cst_21 = arith.constant 1.000000e+00 : f32
    %34 = vector.broadcast %cst_20 : f32 to vector<32x256xf32>
    %35 = arith.maximumf %34, %33 : vector<32x256xf32>
    %36 = vector.broadcast %cst_21 : f32 to vector<32x256xf32>
    %37 = arith.minimumf %36, %35 : vector<32x256xf32>
    %38 = arith.truncf %37 : vector<32x256xf32> to vector<32x256xbf16>
    %c0_22 = arith.constant 0 : index
    %c0_23 = arith.constant 0 : index
    %39 = vector.load %arg4[%c0_22, %c0_23] : memref<256x256xbf16, #tpu.memory_space<vmem>>, vector<256x256xbf16>
    %cst_24 = arith.constant dense<0.000000e+00> : vector<32x256xf32>
    %40 = tpu.matmul %38, %39, %cst_24 {dimension_numbers = #tpu.dot_dimension_numbers<[1], [0], [0], [1], [0, 0, 1, 1], [], []>} : vector<32x256xbf16>, vector<256x256xbf16>, vector<32x256xf32> -> vector<32x256xf32>
    %41 = arith.addf %17, %40 : vector<32x256xf32>
    %cst_25 = arith.constant 0.000000e+00 : f32
    %cst_26 = arith.constant 1.000000e+00 : f32
    %42 = vector.broadcast %cst_25 : f32 to vector<32x256xf32>
    %43 = arith.maximumf %42, %41 : vector<32x256xf32>
    %44 = vector.broadcast %cst_26 : f32 to vector<32x256xf32>
    %45 = arith.minimumf %44, %43 : vector<32x256xf32>
    %c0_27 = arith.constant 0 : index
    %c0_28 = arith.constant 0 : index
    %46 = vector.load %arg5[%c0_27, %c0_28] : memref<32x256xf32, #tpu.memory_space<vmem>>, vector<32x256xf32>
    tpu.vector_store %arg5[%c0_27, %c0_28], %45 {strides = array<i32>} : memref<32x256xf32, #tpu.memory_space<vmem>>, vector<32x256xf32>,
    return
  }
  func.func @transform_0(%arg0: i32) -> (i32, i32) {
    %c0_i32 = arith.constant 0 : i32
    %c0_i32_0 = arith.constant 0 : i32
    return %arg0, %c0_i32 : i32, i32
  }
  func.func @transform_1(%arg0: i32) -> (i32, i32) {
    %c0_i32 = arith.constant 0 : i32
    %c0_i32_0 = arith.constant 0 : i32
    %c0_i32_1 = arith.constant 0 : i32
    return %c0_i32, %c0_i32_0 : i32, i32
  }
  func.func @transform_2(%arg0: i32) -> (i32, i32) {
    %c0_i32 = arith.constant 0 : i32
    %c0_i32_0 = arith.constant 0 : i32
    %c0_i32_1 = arith.constant 0 : i32
    return %c0_i32, %c0_i32_0 : i32, i32
  }
  func.func @transform_3(%arg0: i32) -> (i32, i32) {
    %c0_i32 = arith.constant 0 : i32
    %c0_i32_0 = arith.constant 0 : i32
    %c0_i32_1 = arith.constant 0 : i32
    return %c0_i32, %c0_i32_0 : i32, i32
  }
  func.func @transform_4(%arg0: i32) -> (i32, i32) {
    %c0_i32 = arith.constant 0 : i32
    %c0_i32_0 = arith.constant 0 : i32
    return %arg0, %c0_i32 : i32, i32
  }
}

</mosaic_0001>

<bundles_post_ra>
// kernel: tpu_custom_call.1
= control target key start
LH: loop header
LB: loop body
LE: loop exit
PB: predicated region body
PF: predicated region fallthrough
CT: control target
= control target key end

     0   :  { %9 = vsyncpa [#allocation3], 0  ;;  %s2045_s0 = inlined_call_operand.hbm [shape: f32[32,256], index: 0, kind: input, shape index: {}]   ;;  %s2046_s1 = inlined_call_operand.hbm [shape: bf16[256,512], index: 1, kind: input, shape index: {}]   ;;  %s2047_s2 = inlined_call_operand.hbm [shape: bf16[256,256], index: 2, kind: input, shape index: {}]   ;;  %s2048_s3 = inlined_call_operand.hbm [shape: bf16[256,256], index: 3, kind: input, shape index: {}]   ;;  %s2049_s4 = inlined_call_operand.hbm [shape: f32[32,256], index: 4, kind: output, shape index: {}]  }
   0x1   :  { %10 = vsyncpa [#allocation6], 0 }
   0x2   :  { %11 = vsyncpa [#allocation9], 0 }
   0x3   :  { %12 = vsyncpa [#allocation4], 0  ;;  %s1779_s15 = smov [#allocation5]   ;;  %s1780_s17 = smov [#allocation2]  }
   0x4   :  { %s30_s16 = sshll.u32 %s1779_s15, 4  ;;  %s18_s18 = sshll.u32 %s1780_s17, 4  ;;  %s31_s16 = int_to_ptr.vmem [resolvable:$true] %s30_s16  ;;  %s19_s18 = int_to_ptr.vmem [resolvable:$true] %s18_s18 }
   0x5   :  { %s1679_s19 = scalar_lea.vmem %s31_s16, 8192  ;;  %p1684_p1 = scmp.lt.s32.totalorder %s31_s16, %s31_s16 }
   0x6   :  { %p1680_p0 = scmp.ne.s32.totalorder %s31_s16, %s1679_s19  ;;  %p1685_p2 = scmp.lt.s32.totalorder %s1679_s19, %s1679_s19 }
   0x8   :  { %p1686_p3 = por %p1685_p2, %p1684_p1 }
   0xa   :  { %p1687_p4 = pnand %p1686_p3, %p1680_p0 }
   0xc   :  { %1690 = shalt.err (!%p1687_p4)
}
   0xd   :  { %s1781_s20 = smov 256   ;;  %s1782_s21 = smov 16  }
   0xe   :  { %36 = dma.hbm_to_vmem [thread:$0]  %s2046_s1, 8192, %s31_s16, [#allocation6], %s1781_s20, %s1781_s20, %s1782_s21  }
   0xf   :  { %s1699_s24 = scalar_lea.vmem %s19_s18, 1024  ;;  %p1704_p6 = scmp.lt.s32.totalorder %s19_s18, %s19_s18 }
  0x10   :  { %p1700_p5 = scmp.ne.s32.totalorder %s19_s18, %s1699_s24  ;;  %p1705_p7 = scmp.lt.s32.totalorder %s1699_s24, %s1699_s24 }
  0x12   :  { %p1706_p8 = por %p1705_p7, %p1704_p6 }
  0x14   :  { %p1707_p9 = pnand %p1706_p8, %p1700_p5 }
  0x16   :  { %1710 = shalt.err (!%p1707_p9)
}
  0x17   :  { %24 = dma.hbm_to_vmem [thread:$0]  %s2045_s0, 1024, %s19_s18, [#allocation3], %s1781_s20, %s1781_s20, %s1782_s21  }
  0x18   :  { %s1783_s27 = smov [#allocation7]  }
  0x19   :  { %s42_s28 = sshll.u32 %s1783_s27, 4  ;;  %s43_s28 = int_to_ptr.vmem [resolvable:$true] %s42_s28 }
  0x1a   :  { %s1719_s29 = scalar_lea.vmem %s43_s28, 4096  ;;  %p1724_p11 = scmp.lt.s32.totalorder %s43_s28, %s43_s28 }
  0x1b   :  { %p1720_p10 = scmp.ne.s32.totalorder %s43_s28, %s1719_s29  ;;  %p1725_p12 = scmp.lt.s32.totalorder %s1719_s29, %s1719_s29 }
  0x1d   :  { %p1726_p13 = por %p1725_p12, %p1724_p11 }
  0x1f   :  { %p1727_p0 = pnand %p1726_p13, %p1720_p10 }
  0x21   :  { %1730 = shalt.err (!%p1727_p0)
}
  0x22   :  { %s1784_s1 = smov 128   ;;  %s1785_s30 = smov 8  }
  0x23   :  { %48 = dma.hbm_to_vmem [thread:$0]  %s2047_s2, 4096, %s43_s28, [#allocation6], %s1784_s1, %s1784_s1, %s1785_s30  }
  0x24   :  { %s1786_s7 = smov [#allocation8]  }
  0x25   :  { %s54_s8 = sshll.u32 %s1786_s7, 4  ;;  %s55_s8 = int_to_ptr.vmem [resolvable:$true] %s54_s8 }
  0x26   :  { %s1739_s0 = scalar_lea.vmem %s55_s8, 4096  ;;  %p1744_p2 = scmp.lt.s32.totalorder %s55_s8, %s55_s8 }
  0x27   :  { %p1740_p1 = scmp.ne.s32.totalorder %s55_s8, %s1739_s0  ;;  %p1745_p3 = scmp.lt.s32.totalorder %s1739_s0, %s1739_s0 }
  0x29   :  { %p1746_p4 = por %p1745_p3, %p1744_p2 }
  0x2b   :  { %p1747_p5 = pnand %p1746_p4, %p1740_p1 }
  0x2d   :  { %1750 = shalt.err (!%p1747_p5)
}
  0x2e   :  { %60 = dma.hbm_to_vmem [thread:$0]  %s2048_s3, 4096, %s55_s8, [#allocation9], %s1784_s1, %s1784_s1, %s1785_s30  }
  0x2f   :  { %1771 = dma.done.wait [#allocation3], 1024  }
  0x30   :  { %1772 = vsyncadd [#allocation3], 4294966272 }
  0x31   :  { %1773 = dma.done.wait [#allocation6], 12288  }
  0x32   :  { %1774 = vsyncadd [#allocation6], 4294955008 }
  0x33   :  { %1775 = dma.done.wait [#allocation9], 4096  }
  0x34   :  { %1776 = vsyncadd [#allocation9], 4294963200  ;;  %v1479_v0 = vld [vmem:[#allocation5 + $0xe4] ss:$16 sps:$4 sm:$0xff]   ;;  %v1481_v1 = vld [vmem:[#allocation5 + $0xec] ss:$16 sps:$4 sm:$0xff]  }
  0x35   :  { %469 = vmatprep.subr.bf16.mxu0 %v1479_v0  ;;  %v1483_v2 = vld [vmem:[#allocation5 + $0xe0] ss:$16 sps:$4 sm:$0xff]   ;;  %v1484_v3 = vld [vmem:[#allocation5 + $0xe8] ss:$16 sps:$4 sm:$0xff]   ;;  %522 = vmatprep.subr.bf16.mxu1 %v1481_v1  ;;  %v1485_v4 = vld [vmem:[#allocation5 + $0xc4] ss:$16 sps:$4 sm:$0xff]  }
  0x36   :  { %470 = vmatpush1.bf16.msra.mxu0 %v1483_v2  ;;  %523 = vmatpush1.bf16.msra.mxu1 %v1484_v3  ;;  %v1487_v5 = vld [vmem:[#allocation5 + $0xcc] ss:$16 sps:$4 sm:$0xff]   ;;  %v1489_v6 = vld [vmem:[#allocation5 + $0xc0] ss:$16 sps:$4 sm:$0xff]   ;;  %v1490_v7 = vld [vmem:[#allocation5 + $0xc8] ss:$16 sps:$4 sm:$0xff]  }
  0x37   :  { %471 = vmatprep.subr.bf16.mxu0 %v1485_v4  ;;  %524 = vmatprep.subr.bf16.mxu1 %v1487_v5  ;;  %v1491_v8 = vld [vmem:[#allocation5 + $0xa4] ss:$16 sps:$4 sm:$0xff]   ;;  %v1493_v9 = vld [vmem:[#allocation5 + $0xac] ss:$16 sps:$4 sm:$0xff]   ;;  %v1495_v10 = vld [vmem:[#allocation5 + $0xa0] ss:$16 sps:$4 sm:$0xff]  }
  0x38   :  { %v1496_v11 = vld [vmem:[#allocation5 + $0xa8] ss:$16 sps:$4 sm:$0xff]   ;;  %v1497_v12 = vld [vmem:[#allocation5 + $0x84] ss:$16 sps:$4 sm:$0xff]   ;;  %v1499_v13 = vld [vmem:[#allocation5 + $0x8c] ss:$16 sps:$4 sm:$0xff]  }
  0x39   :  { %v1501_v14 = vld [vmem:[#allocation5 + $0x80] ss:$16 sps:$4 sm:$0xff]   ;;  %v1502_v15 = vld [vmem:[#allocation5 + $0x88] ss:$16 sps:$4 sm:$0xff]   ;;  %v1503_v16 = vld [vmem:[#allocation5 + $0x64] ss:$16 sps:$4 sm:$0xff]  }
  0x3a   :  { %472 = vmatpush1.bf16.msra.mxu0 %v1489_v6  ;;  %525 = vmatpush1.bf16.msra.mxu1 %v1490_v7  ;;  %v1505_v17 = vld [vmem:[#allocation5 + $0x6c] ss:$16 sps:$4 sm:$0xff]   ;;  %v1507_v18 = vld [vmem:[#allocation5 + $0x60] ss:$16 sps:$4 sm:$0xff]   ;;  %v1508_v19 = vld [vmem:[#allocation5 + $0x68] ss:$16 sps:$4 sm:$0xff]  }
  0x3b   :  { %473 = vmatprep.subr.bf16.mxu0 %v1491_v8  ;;  %526 = vmatprep.subr.bf16.mxu1 %v1493_v9  ;;  %v1509_v20 = vld [vmem:[#allocation5 + $0x44] ss:$16 sps:$4 sm:$0xff]   ;;  %v1511_v21 = vld [vmem:[#allocation5 + $0x4c] ss:$16 sps:$4 sm:$0xff]   ;;  %v1513_v22 = vld [vmem:[#allocation5 + $0x40] ss:$16 sps:$4 sm:$0xff]  }
  0x3c   :  { %v1514_v23 = vld [vmem:[#allocation5 + $0x48] ss:$16 sps:$4 sm:$0xff]   ;;  %v1515_v24 = vld [vmem:[#allocation5 + $0x24] ss:$16 sps:$4 sm:$0xff]   ;;  %v1517_v25 = vld [vmem:[#allocation5 + $0x2c] ss:$16 sps:$4 sm:$0xff]  }
  0x3d   :  { %v1519_v26 = vld [vmem:[#allocation5 + $0x20] ss:$16 sps:$4 sm:$0xff]   ;;  %v1520_v27 = vld [vmem:[#allocation5 + $0x28] ss:$16 sps:$4 sm:$0xff]   ;;  %v1521_v28 = vld [vmem:[#allocation5 + $0x4] ss:$16 sps:$4 sm:$0xff]  }
  0x3e   :  { %474 = vmatpush1.bf16.msra.mxu0 %v1495_v10  ;;  %527 = vmatpush1.bf16.msra.mxu1 %v1496_v11  ;;  %v1523_v29 = vld [vmem:[#allocation5 + $0xc] ss:$16 sps:$4 sm:$0xff]   ;;  %v1525_v30 = vld [vmem:[#allocation5] ss:$16 sps:$4 sm:$0xff]   ;;  %v1526_v31 = vld [vmem:[#allocation5 + $0x8] ss:$16 sps:$4 sm:$0xff]  }
  0x3f   :  { %475 = vmatprep.subr.bf16.mxu0 %v1497_v12  ;;  %528 = vmatprep.subr.bf16.mxu1 %v1499_v13  ;;  %v1527_v32 = vld [vmem:[#allocation5 + $0x1e4] ss:$16 sps:$4 sm:$0xff]   ;;  %v1529_v33 = vld [vmem:[#allocation5 + $0x1ec] ss:$16 sps:$4 sm:$0xff]   ;;  %v1531_v34 = vld [vmem:[#allocation5 + $0x1e0] ss:$16 sps:$4 sm:$0xff]  }
  0x40   :  { %v1532_v35 = vld [vmem:[#allocation5 + $0x1e8] ss:$16 sps:$4 sm:$0xff]   ;;  %v1533_v36 = vld [vmem:[#allocation5 + $0x1c4] ss:$16 sps:$4 sm:$0xff]   ;;  %v1535_v37 = vld [vmem:[#allocation5 + $0x1cc] ss:$16 sps:$4 sm:$0xff]  }
  0x41   :  { %v1537_v38 = vld [vmem:[#allocation5 + $0x1c0] ss:$16 sps:$4 sm:$0xff]   ;;  %v1538_v39 = vld [vmem:[#allocation5 + $0x1c8] ss:$16 sps:$4 sm:$0xff]   ;;  %v1539_v40 = vld [vmem:[#allocation5 + $0x1a4] ss:$16 sps:$4 sm:$0xff]  }
  0x42   :  { %476 = vmatpush1.bf16.msra.mxu0 %v1501_v14  ;;  %529 = vmatpush1.bf16.msra.mxu1 %v1502_v15  ;;  %v1541_v41 = vld [vmem:[#allocation5 + $0x1ac] ss:$16 sps:$4 sm:$0xff]   ;;  %v1543_v42 = vld [vmem:[#allocation5 + $0x1a0] ss:$16 sps:$4 sm:$0xff]   ;;  %v1544_v43 = vld [vmem:[#allocation5 + $0x1a8] ss:$16 sps:$4 sm:$0xff]  }
  0x43   :  { %477 = vmatprep.subr.bf16.mxu0 %v1503_v16  ;;  %530 = vmatprep.subr.bf16.mxu1 %v1505_v17  ;;  %v1545_v44 = vld [vmem:[#allocation5 + $0x184] ss:$16 sps:$4 sm:$0xff]   ;;  %v1547_v45 = vld [vmem:[#allocation5 + $0x18c] ss:$16 sps:$4 sm:$0xff]   ;;  %v1549_v48 = vld [vmem:[#allocation5 + $0x180] ss:$16 sps:$4 sm:$0xff]  }
  0x44   :  { %v74_v46 = vld [vmem:[#allocation2 + $0x8] sm:$0xff]  ;;  %v76_v47 = vld [vmem:[#allocation2 + $0x18] sm:$0xff]  ;;  %v1551_v50 = vld [vmem:[#allocation5 + $0x164] ss:$16 sps:$4 sm:$0xff]   ;;  %s1787_s2 = smov [#allocation10]  }
  0x45   :  { %v1550_v49 = vld [vmem:[#allocation5 + $0x188] ss:$16 sps:$4 sm:$0xff]   ;;  %v82_v51 = vpack.c.bf16 %v76_v47, %v74_v46  ;;  %v1553_v52 = vld [vmem:[#allocation5 + $0x16c] ss:$16 sps:$4 sm:$0xff]   ;;  %v1555_v53 = vld [vmem:[#allocation5 + $0x160] ss:$16 sps:$4 sm:$0xff]  }
  0x46   :  { %478 = vmatpush1.bf16.msra.mxu0 %v1507_v18  ;;  %531 = vmatpush1.bf16.msra.mxu1 %v1508_v19  ;;  %v1556_v54 = vld [vmem:[#allocation5 + $0x168] ss:$16 sps:$4 sm:$0xff]   ;;  %v1557_v55 = vld [vmem:[#allocation5 + $0x144] ss:$16 sps:$4 sm:$0xff]   ;;  %v1559_v56 = vld [vmem:[#allocation5 + $0x14c] ss:$16 sps:$4 sm:$0xff]  }
  0x47   :  { %479 = vmatprep.subr.bf16.mxu0 %v1509_v20  ;;  %532 = vmatprep.subr.bf16.mxu1 %v1511_v21  ;;  %v1561_v57 = vld [vmem:[#allocation5 + $0x140] ss:$16 sps:$4 sm:$0xff]   ;;  %v1562_v58 = vld [vmem:[#allocation5 + $0x148] ss:$16 sps:$4 sm:$0xff]   ;;  %v1563_v59 = vld [vmem:[#allocation5 + $0x124] ss:$16 sps:$4 sm:$0xff]  }
  0x48   :  { %501 = vmatprep.mubr.bf16.mxu0 %v82_v51  ;;  %554 = vmatprep.mubr.bf16.mxu1 %v82_v51  ;;  %v1565_v60 = vld [vmem:[#allocation5 + $0x12c] ss:$16 sps:$4 sm:$0xff]   ;;  %v1567_v61 = vld [vmem:[#allocation5 + $0x120] ss:$16 sps:$4 sm:$0xff]   ;;  %v1568_v62 = vld [vmem:[#allocation5 + $0x128] ss:$16 sps:$4 sm:$0xff]  }
  0x49   :  { %v1569_v63 = vld [vmem:[#allocation5 + $0x104] ss:$16 sps:$4 sm:$0xff]   ;;  %v1571_v0 = vld [vmem:[#allocation5 + $0x10c] ss:$16 sps:$4 sm:$0xff]   ;;  %v1573_v1 = vld [vmem:[#allocation5 + $0x100] ss:$16 sps:$4 sm:$0xff]  }
  0x4a   :  { %480 = vmatpush1.bf16.msra.mxu0 %v1513_v22  ;;  %533 = vmatpush1.bf16.msra.mxu1 %v1514_v23  ;;  %v1574_v2 = vld [vmem:[#allocation5 + $0x108] ss:$16 sps:$4 sm:$0xff]   ;;  %v73_v3 = vld [vmem:[#allocation2] sm:$0xff]  ;;  %v75_v4 = vld [vmem:[#allocation2 + $0x10] sm:$0xff]  ;;  %s1328_s3 = sshll.u32 %s1787_s2, 4  ;;  %s1329_s3 = int_to_ptr.vmem [resolvable:$true] %s1328_s3 }
  0x4b   :  { %481 = vmatprep.subr.bf16.mxu0 %v1515_v24  ;;  %534 = vmatprep.subr.bf16.mxu1 %v1517_v25  ;;  %v78_v5 = vld [vmem:[#allocation2 + $0x28] sm:$0xff]  ;;  %v80_v6 = vld [vmem:[#allocation2 + $0x38] sm:$0xff]  ;;  %v81_v8 = vpack.c.bf16 %v75_v4, %v73_v3  ;;  %v77_v12 = vld [vmem:[#allocation2 + $0x20] sm:$0xff]  ;;  %s1751_s11 = scalar_lea.vmem %s1329_s3, 1024  ;;  %p1756_p7 = scmp.lt.s32.totalorder %s1329_s3, %s1329_s3 }
  0x4c   :  { %v1577_v7 = vld [vmem:[#allocation7 + $0x74] ss:$8 sps:$4 sm:$0xff]   ;;  %v1575_v9 = vld [vmem:[#allocation7 + $0x70] ss:$8 sps:$4 sm:$0xff]   ;;  %v84_v10 = vpack.c.bf16 %v80_v6, %v78_v5  ;;  %v1580_v11 = vld [vmem:[#allocation7 + $0x64] ss:$8 sps:$4 sm:$0xff]   ;;  %p1752_p6 = scmp.ne.s32.totalorder %s1329_s3, %s1751_s11  ;;  %p1757_p8 = scmp.lt.s32.totalorder %s1751_s11, %s1751_s11 }
  0x4d   :  { %v79_v13 = vld [vmem:[#allocation2 + $0x30] sm:$0xff]  ;;  %v1578_v14 = vld [vmem:[#allocation7 + $0x60] ss:$8 sps:$4 sm:$0xff]   ;;  %v1586_v18 = vld [vmem:[#allocation7 + $0x44] ss:$8 sps:$4 sm:$0xff]  }
  0x4e   :  { %482 = vmatpush1.bf16.msra.mxu0 %v1519_v26  ;;  %535 = vmatpush1.bf16.msra.mxu1 %v1520_v27  ;;  %v1583_v15 = vld [vmem:[#allocation7 + $0x54] ss:$8 sps:$4 sm:$0xff]   ;;  %v83_v16 = vpack.c.bf16 %v79_v13, %v77_v12  ;;  %v1581_v17 = vld [vmem:[#allocation7 + $0x50] ss:$8 sps:$4 sm:$0xff]   ;;  %v1584_v19 = vld [vmem:[#allocation7 + $0x40] ss:$8 sps:$4 sm:$0xff]   ;;  %p1758_p9 = por %p1757_p8, %p1756_p7 }
  0x4f   :  { %483 = vmatprep.subr.bf16.mxu0 %v1521_v28  ;;  %536 = vmatprep.subr.bf16.mxu1 %v1523_v29  ;;  %v1589_v20 = vld [vmem:[#allocation7 + $0x34] ss:$8 sps:$4 sm:$0xff]   ;;  %v1587_v21 = vld [vmem:[#allocation7 + $0x30] ss:$8 sps:$4 sm:$0xff]   ;;  %v1592_v22 = vld [vmem:[#allocation7 + $0x24] ss:$8 sps:$4 sm:$0xff]  }
  0x50   :  { %v1590_v23 = vld [vmem:[#allocation7 + $0x20] ss:$8 sps:$4 sm:$0xff]   ;;  %v1595_v24 = vld [vmem:[#allocation7 + $0x14] ss:$8 sps:$4 sm:$0xff]   ;;  %v1593_v25 = vld [vmem:[#allocation7 + $0x10] ss:$8 sps:$4 sm:$0xff]   ;;  %p1759_p10 = pnand %p1758_p9, %p1752_p6 }
  0x51   :  { %v1598_v26 = vld [vmem:[#allocation7 + $0x4] ss:$8 sps:$4 sm:$0xff]   ;;  %v1596_v27 = vld [vmem:[#allocation7] ss:$8 sps:$4 sm:$0xff]   ;;  %v1601_v28 = vld [vmem:[#allocation7 + $0xf4] ss:$8 sps:$4 sm:$0xff]  }
  0x52   :  { %484 = vmatpush1.bf16.msra.mxu0 %v1525_v30  ;;  %537 = vmatpush1.bf16.msra.mxu1 %v1526_v31  ;;  %v1599_v29 = vld [vmem:[#allocation7 + $0xf0] ss:$8 sps:$4 sm:$0xff]   ;;  %v1604_v30 = vld [vmem:[#allocation7 + $0xe4] ss:$8 sps:$4 sm:$0xff]   ;;  %v1602_v31 = vld [vmem:[#allocation7 + $0xe0] ss:$8 sps:$4 sm:$0xff]  }
  0x53   :  { %485 = vmatprep.subr.bf16.mxu0 %v1527_v32  ;;  %538 = vmatprep.subr.bf16.mxu1 %v1529_v33  ;;  %v1607_v32 = vld [vmem:[#allocation7 + $0xd4] ss:$8 sps:$4 sm:$0xff]   ;;  %v1605_v33 = vld [vmem:[#allocation7 + $0xd0] ss:$8 sps:$4 sm:$0xff]   ;;  %v1835_v46 = vld [vmem:[#allocation8 + $0x64] ss:$8 sps:$4 sm:$0xff]  }
  0x54   :  { %v1840_v47 = vld [vmem:[#allocation8 + $0x60] ss:$8 sps:$4 sm:$0xff]   ;;  %v1903_v4 = vld [vmem:[#allocation8 + $0xb4] ss:$8 sps:$4 sm:$0xff]   ;;  %v1906_v5 = vld [vmem:[#allocation8 + $0xb0] ss:$8 sps:$4 sm:$0xff]  }
  0x55   :  { %v1852_v51 = vld [vmem:[#allocation8 + $0x40] ss:$8 sps:$4 sm:$0xff]  }
  0x56   :  { %486 = vmatpush2.bf16.msra.mxu0 %v1531_v34  ;;  %539 = vmatpush2.bf16.msra.mxu1 %v1532_v35  ;;  %v1610_v34 = vld [vmem:[#allocation7 + $0xc4] ss:$8 sps:$4 sm:$0xff]   ;;  %v1608_v35 = vld [vmem:[#allocation7 + $0xc0] ss:$8 sps:$4 sm:$0xff]  }
  0x57   :  { %487 = vmatprep.subr.bf16.mxu0 %v1533_v36  ;;  %540 = vmatprep.subr.bf16.mxu1 %v1535_v37  ;;  %v1613_v36 = vld [vmem:[#allocation7 + $0xb4] ss:$8 sps:$4 sm:$0xff]   ;;  %v1611_v37 = vld [vmem:[#allocation7 + $0xb0] ss:$8 sps:$4 sm:$0xff]   ;;  %v1900_v3 = vld [vmem:[#allocation8 + $0xc0] ss:$8 sps:$4 sm:$0xff]  }
  0x5a   :  { %488 = vmatpush2.bf16.msra.mxu0 %v1537_v38  ;;  %541 = vmatpush2.bf16.msra.mxu1 %v1538_v39  ;;  %v1616_v38 = vld [vmem:[#allocation7 + $0xa4] ss:$8 sps:$4 sm:$0xff]   ;;  %v1614_v39 = vld [vmem:[#allocation7 + $0xa0] ss:$8 sps:$4 sm:$0xff]  }
  0x5b   :  { %489 = vmatprep.subr.bf16.mxu0 %v1539_v40  ;;  %542 = vmatprep.subr.bf16.mxu1 %v1541_v41  ;;  %v1619_v40 = vld [vmem:[#allocation7 + $0x94] ss:$8 sps:$4 sm:$0xff]   ;;  %v1617_v41 = vld [vmem:[#allocation7 + $0x90] ss:$8 sps:$4 sm:$0xff]  }
  0x5e   :  { %490 = vmatpush2.bf16.msra.mxu0 %v1543_v42  ;;  %543 = vmatpush2.bf16.msra.mxu1 %v1544_v43  ;;  %v1622_v42 = vld [vmem:[#allocation7 + $0x84] ss:$8 sps:$4 sm:$0xff]   ;;  %v1620_v43 = vld [vmem:[#allocation7 + $0x80] ss:$8 sps:$4 sm:$0xff]  }
  0x5f   :  { %491 = vmatprep.subr.bf16.mxu0 %v1545_v44  ;;  %544 = vmatprep.subr.bf16.mxu1 %v1547_v45  ;;  %v1831_v44 = vld [vmem:[#allocation8 + $0x70] ss:$8 sps:$4 sm:$0xff]   ;;  %v1833_v45 = vld [vmem:[#allocation8 + $0x74] ss:$8 sps:$4 sm:$0xff]  }
  0x62   :  { %492 = vmatpush2.bf16.msra.mxu0 %v1549_v48  ;;  %545 = vmatpush2.bf16.msra.mxu1 %v1550_v49  ;;  %v1843_v48 = vld [vmem:[#allocation8 + $0x54] ss:$8 sps:$4 sm:$0xff]   ;;  %v1846_v49 = vld [vmem:[#allocation8 + $0x50] ss:$8 sps:$4 sm:$0xff]  }
  0x63   :  { %493 = vmatprep.subr.bf16.mxu0 %v1551_v50  ;;  %546 = vmatprep.subr.bf16.mxu1 %v1553_v52  ;;  %v1849_v50 = vld [vmem:[#allocation8 + $0x44] ss:$8 sps:$4 sm:$0xff]   ;;  %v1855_v52 = vld [vmem:[#allocation8 + $0x34] ss:$8 sps:$4 sm:$0xff]  }
  0x66   :  { %494 = vmatpush2.bf16.msra.mxu0 %v1555_v53  ;;  %547 = vmatpush2.bf16.msra.mxu1 %v1556_v54  ;;  %v1858_v53 = vld [vmem:[#allocation8 + $0x30] ss:$8 sps:$4 sm:$0xff]   ;;  %v1861_v54 = vld [vmem:[#allocation8 + $0x24] ss:$8 sps:$4 sm:$0xff]  }
  0x67   :  { %495 = vmatprep.subr.bf16.mxu0 %v1557_v55  ;;  %548 = vmatprep.subr.bf16.mxu1 %v1559_v56  ;;  %v1864_v55 = vld [vmem:[#allocation8 + $0x20] ss:$8 sps:$4 sm:$0xff]   ;;  %v1867_v56 = vld [vmem:[#allocation8 + $0x14] ss:$8 sps:$4 sm:$0xff]  }
  0x6a   :  { %496 = vmatpush2.bf16.msra.mxu0 %v1561_v57  ;;  %549 = vmatpush2.bf16.msra.mxu1 %v1562_v58  ;;  %v1870_v57 = vld [vmem:[#allocation8 + $0x10] ss:$8 sps:$4 sm:$0xff]   ;;  %v1873_v58 = vld [vmem:[#allocation8 + $0x4] ss:$8 sps:$4 sm:$0xff]  }
  0x6b   :  { %497 = vmatprep.subr.bf16.mxu0 %v1563_v59  ;;  %550 = vmatprep.subr.bf16.mxu1 %v1565_v60  ;;  %v1876_v59 = vld [vmem:[#allocation8] ss:$8 sps:$4 sm:$0xff]   ;;  %v1879_v60 = vld [vmem:[#allocation8 + $0xf4] ss:$8 sps:$4 sm:$0xff]  }
  0x6e   :  { %498 = vmatpush2.bf16.msra.mxu0 %v1567_v61  ;;  %551 = vmatpush2.bf16.msra.mxu1 %v1568_v62  ;;  %v1882_v61 = vld [vmem:[#allocation8 + $0xf0] ss:$8 sps:$4 sm:$0xff]   ;;  %v1885_v62 = vld [vmem:[#allocation8 + $0xe4] ss:$8 sps:$4 sm:$0xff]  }
  0x6f   :  { %499 = vmatprep.subr.bf16.mxu0 %v1569_v63  ;;  %552 = vmatprep.subr.bf16.mxu1 %v1571_v0  ;;  %v1888_v63 = vld [vmem:[#allocation8 + $0xe0] ss:$8 sps:$4 sm:$0xff]   ;;  %v1891_v0 = vld [vmem:[#allocation8 + $0xd4] ss:$8 sps:$4 sm:$0xff]  }
  0x72   :  { %500 = vmatpush2.bf16.msra.mxu0 %v1573_v1  ;;  %553 = vmatpush2.bf16.msra.mxu1 %v1574_v2  ;;  %v1894_v1 = vld [vmem:[#allocation8 + $0xd0] ss:$8 sps:$4 sm:$0xff]   ;;  %v1897_v2 = vld [vmem:[#allocation8 + $0xc4] ss:$8 sps:$4 sm:$0xff]  }
  0x73   :  { %811 = vmatprep.subr.bf16.mxu0 %v1577_v7  ;;  %1076 = vmatprep.subr.bf16.mxu1 %v1833_v45 }
  0x75   :  { %502 = vmatmul.mubr.bf16.vlgmr.msra.gmra.mxu0 %v81_v8  ;;  %555 = vmatmul.mubr.bf16.vlgmr.msra.gmra.mxu1 %v81_v8 }
  0x76   :  { %511 = vmatprep.mubr.bf16.mxu0 %v84_v10  ;;  %564 = vmatprep.mubr.bf16.mxu1 %v84_v10 }
  0x77   :  { %812 = vmatpush1.bf16.msra.mxu0 %v1575_v9  ;;  %1077 = vmatpush1.bf16.msra.mxu1 %v1831_v44 }
  0x78   :  { %813 = vmatprep.subr.bf16.mxu0 %v1580_v11  ;;  %1078 = vmatprep.subr.bf16.mxu1 %v1835_v46 }
  0x7b   :  { %814 = vmatpush1.bf16.msra.mxu0 %v1578_v14  ;;  %1079 = vmatpush1.bf16.msra.mxu1 %v1840_v47 }
  0x7c   :  { %815 = vmatprep.subr.bf16.mxu0 %v1583_v15  ;;  %1080 = vmatprep.subr.bf16.mxu1 %v1843_v48 }
  0x7d   :  { %512 = vmatmul.mubr.bf16.gmra.mxu0 %v83_v16  ;;  %565 = vmatmul.mubr.bf16.gmra.mxu1 %v83_v16 }
  0x7f   :  { %816 = vmatpush1.bf16.msra.mxu0 %v1581_v17  ;;  %1081 = vmatpush1.bf16.msra.mxu1 %v1846_v49 }
  0x80   :  { %817 = vmatprep.subr.bf16.mxu0 %v1586_v18  ;;  %1082 = vmatprep.subr.bf16.mxu1 %v1849_v50 }
  0x83   :  { %818 = vmatpush1.bf16.msra.mxu0 %v1584_v19  ;;  %1083 = vmatpush1.bf16.msra.mxu1 %v1852_v51 }
  0x84   :  { %819 = vmatprep.subr.bf16.mxu0 %v1589_v20  ;;  %1084 = vmatprep.subr.bf16.mxu1 %v1855_v52 }
  0x87   :  { %820 = vmatpush1.bf16.msra.mxu0 %v1587_v21  ;;  %1085 = vmatpush1.bf16.msra.mxu1 %v1858_v53 }
  0x88   :  { %821 = vmatprep.subr.bf16.mxu0 %v1592_v22  ;;  %1086 = vmatprep.subr.bf16.mxu1 %v1861_v54 }
  0x8b   :  { %822 = vmatpush1.bf16.msra.mxu0 %v1590_v23  ;;  %1087 = vmatpush1.bf16.msra.mxu1 %v1864_v55 }
  0x8c   :  { %823 = vmatprep.subr.bf16.mxu0 %v1595_v24  ;;  %1088 = vmatprep.subr.bf16.mxu1 %v1867_v56 }
  0x8f   :  { %824 = vmatpush1.bf16.msra.mxu0 %v1593_v25  ;;  %1089 = vmatpush1.bf16.msra.mxu1 %v1870_v57 }
  0x90   :  { %825 = vmatprep.subr.bf16.mxu0 %v1598_v26  ;;  %1090 = vmatprep.subr.bf16.mxu1 %v1873_v58 }
  0x93   :  { %826 = vmatpush1.bf16.msra.mxu0 %v1596_v27  ;;  %1091 = vmatpush1.bf16.msra.mxu1 %v1876_v59 }
  0x94   :  { %827 = vmatprep.subr.bf16.mxu0 %v1601_v28  ;;  %1092 = vmatprep.subr.bf16.mxu1 %v1879_v60 }
  0x97   :  { %828 = vmatpush2.bf16.msra.mxu0 %v1599_v29  ;;  %1093 = vmatpush2.bf16.msra.mxu1 %v1882_v61 }
  0x98   :  { %829 = vmatprep.subr.bf16.mxu0 %v1604_v30  ;;  %1094 = vmatprep.subr.bf16.mxu1 %v1885_v62 }
  0x9b   :  { %830 = vmatpush2.bf16.msra.mxu0 %v1602_v31  ;;  %1095 = vmatpush2.bf16.msra.mxu1 %v1888_v63 }
  0x9c   :  { %831 = vmatprep.subr.bf16.mxu0 %v1607_v32  ;;  %1096 = vmatprep.subr.bf16.mxu1 %v1891_v0 }
  0x9f   :  { %832 = vmatpush2.bf16.msra.mxu0 %v1605_v33  ;;  %1097 = vmatpush2.bf16.msra.mxu1 %v1894_v1 }
  0xa0   :  { %833 = vmatprep.subr.bf16.mxu0 %v1610_v34  ;;  %1098 = vmatprep.subr.bf16.mxu1 %v1897_v2 }
  0xa3   :  { %834 = vmatpush2.bf16.msra.mxu0 %v1608_v35  ;;  %1099 = vmatpush2.bf16.msra.mxu1 %v1900_v3 }
  0xa4   :  { %835 = vmatprep.subr.bf16.mxu0 %v1613_v36  ;;  %1100 = vmatprep.subr.bf16.mxu1 %v1903_v4 }
  0xa7   :  { %836 = vmatpush2.bf16.msra.mxu0 %v1611_v37  ;;  %1101 = vmatpush2.bf16.msra.mxu1 %v1906_v5 }
  0xa8   :  { %837 = vmatprep.subr.bf16.mxu0 %v1616_v38 }
  0xab   :  { %838 = vmatpush2.bf16.msra.mxu0 %v1614_v39 }
  0xac   :  { %839 = vmatprep.subr.bf16.mxu0 %v1619_v40 }
  0xaf   :  { %840 = vmatpush2.bf16.msra.mxu0 %v1617_v41 }
  0xb0   :  { %841 = vmatprep.subr.bf16.mxu0 %v1622_v42 }
  0xb3   :  { %842 = vmatpush2.bf16.msra.mxu0 %v1620_v43 }
  0xb4   :  { %1157 = vmatprep.subr.bf16.mxu0 %v1833_v45 }
 0x135   :  { %v503_v6 = vpop.f32.mrf.mxu0  ;;  %v556_v7 = vpop.f32.mrf.mxu1 }
 0x136   :  { %v575_v10 = vmax.f32 %v503_v6, 0.0  ;;  %v591_v11 = vmax.f32 %v556_v7, 0.0 }
 0x137   :  { %v505_v8 = vpop.f32.mrf.mxu0  ;;  %v558_v9 = vpop.f32.mrf.mxu1 }
 0x138   :  { %v576_v12 = vmax.f32 %v505_v8, 0.0  ;;  %v592_v13 = vmax.f32 %v558_v9, 0.0  ;;  %v583_v20 = vmin.f32 %v575_v10, 1.0  ;;  %v599_v24 = vmin.f32 %v591_v11, 1.0 }
 0x139   :  { %v507_v14 = vpop.f32.mrf.mxu0  ;;  %v560_v15 = vpop.f32.mrf.mxu1 }
 0x13a   :  { %v577_v16 = vmax.f32 %v507_v14, 0.0  ;;  %v593_v17 = vmax.f32 %v560_v15, 0.0  ;;  %v584_v25 = vmin.f32 %v576_v12, 1.0  ;;  %v600_v26 = vmin.f32 %v592_v13, 1.0 }
 0x13b   :  { %v509_v18 = vpop.f32.mrf.mxu0  ;;  %v562_v19 = vpop.f32.mrf.mxu1  ;;  %v607_v37 = vadd.f32 %v599_v24, %v583_v20 }
 0x13c   :  { %v585_v21 = vmin.f32 %v577_v16, 1.0  ;;  %v578_v22 = vmax.f32 %v509_v18, 0.0  ;;  %v594_v23 = vmax.f32 %v562_v19, 0.0  ;;  %v601_v27 = vmin.f32 %v593_v17, 1.0 }
 0x13d   :  { %v513_v28 = vpop.f32.mrf.mxu0  ;;  %v566_v29 = vpop.f32.mrf.mxu1  ;;  %v608_v38 = vadd.f32 %v600_v26, %v584_v25 }
 0x13e   :  { %v586_v30 = vmin.f32 %v578_v22, 1.0  ;;  %v602_v31 = vmin.f32 %v594_v23, 1.0  ;;  %v609_v32 = vadd.f32 %v601_v27, %v585_v21  ;;  %v579_v42 = vmax.f32 %v513_v28, 0.0  ;;  %v1935_v28 = vld [vmem:[#allocation8 + $0xa4] ss:$8 sps:$4 sm:$0xff]  }
 0x13f   :  { %v515_v33 = vpop.f32.mrf.mxu0  ;;  %v568_v34 = vpop.f32.mrf.mxu1  ;;  %v595_v43 = vmax.f32 %v566_v29, 0.0  ;;  %v1937_v29 = vld [vmem:[#allocation8 + $0xa0] ss:$8 sps:$4 sm:$0xff]   ;;  %1102 = vmatprep.subr.bf16.mxu1 %v1935_v28 }
 0x140   :  { %v610_v35 = vadd.f32 %v602_v31, %v586_v30  ;;  %v580_v36 = vmax.f32 %v515_v33, 0.0  ;;  %v596_v39 = vmax.f32 %v568_v34, 0.0  ;;  %v615_v8 = vpack.c.bf16 %v609_v32, %v607_v37  ;;  %1103 = vmatpush2.bf16.msra.mxu1 %v1937_v29  ;;  %v1943_v30 = vld [vmem:[#allocation8 + $0x94] ss:$8 sps:$4 sm:$0xff]   ;;  %v1945_v31 = vld [vmem:[#allocation8 + $0x90] ss:$8 sps:$4 sm:$0xff]  }
 0x141   :  { %v517_v40 = vpop.f32.mrf.mxu0  ;;  %v570_v41 = vpop.f32.mrf.mxu1  ;;  %v587_v18 = vmin.f32 %v579_v42, 1.0  ;;  %v603_v19 = vmin.f32 %v595_v43, 1.0  ;;  %1104 = vmatprep.subr.bf16.mxu1 %v1943_v30  ;;  %v1951_v32 = vld [vmem:[#allocation8 + $0x84] ss:$8 sps:$4 sm:$0xff]   ;;  %v1953_v33 = vld [vmem:[#allocation8 + $0x80] ss:$8 sps:$4 sm:$0xff]  }
 0x142   :  { %v581_v6 = vmax.f32 %v517_v40, 0.0  ;;  %v597_v7 = vmax.f32 %v570_v41, 0.0  ;;  %v588_v9 = vmin.f32 %v580_v36, 1.0  ;;  %v604_v10 = vmin.f32 %v596_v39, 1.0 }
 0x143   :  { %v519_v11 = vpop.f32.mrf.mxu0  ;;  %v572_v12 = vpop.f32.mrf.mxu1  ;;  %v616_v13 = vpack.c.bf16 %v610_v35, %v608_v38  ;;  %v611_v25 = vadd.f32 %v603_v19, %v587_v18 }
 0x144   :  { %v589_v14 = vmin.f32 %v581_v6, 1.0  ;;  %v605_v15 = vmin.f32 %v597_v7, 1.0  ;;  %v582_v16 = vmax.f32 %v519_v11, 0.0  ;;  %v598_v17 = vmax.f32 %v572_v12, 0.0  ;;  %1105 = vmatpush2.bf16.msra.mxu1 %v1945_v31 }
 0x145   :  { %843 = vmatprep.mubr.bf16.mxu0 %v616_v13  ;;  %v612_v22 = vadd.f32 %v604_v10, %v588_v9  ;;  %1106 = vmatprep.subr.bf16.mxu1 %v1951_v32 }
 0x146   :  { %v590_v20 = vmin.f32 %v582_v16, 1.0  ;;  %v606_v21 = vmin.f32 %v598_v17, 1.0  ;;  %844 = vmatmul.mubr.bf16.vlgmr.msra.gmra.mxu0 %v615_v8  ;;  %v613_v23 = vadd.f32 %v605_v15, %v589_v14 }
 0x147   :  { %1158 = vmatpush1.bf16.msra.mxu0 %v1831_v44 }
 0x148   :  { %v614_v24 = vadd.f32 %v606_v21, %v590_v20  ;;  %1159 = vmatprep.subr.bf16.mxu0 %v1835_v46  ;;  %v617_v27 = vpack.c.bf16 %v613_v23, %v611_v25  ;;  %1107 = vmatpush2.bf16.msra.mxu1 %v1953_v33 }
 0x149   :  { %1238 = vmatprep.subr.bf16.mxu1 %v1833_v45 }
 0x14a   :  { %v618_v26 = vpack.c.bf16 %v614_v24, %v612_v22 }
 0x14b   :  { %1160 = vmatpush1.bf16.msra.mxu0 %v1840_v47 }
 0x14c   :  { %853 = vmatprep.mubr.bf16.mxu0 %v618_v26  ;;  %1161 = vmatprep.subr.bf16.mxu0 %v1843_v48 }
 0x14e   :  { %854 = vmatmul.mubr.bf16.gmra.mxu0 %v617_v27 }
 0x14f   :  { %1162 = vmatpush1.bf16.msra.mxu0 %v1846_v49 }
 0x150   :  { %1163 = vmatprep.subr.bf16.mxu0 %v1849_v50 }
 0x153   :  { %1164 = vmatpush1.bf16.msra.mxu0 %v1852_v51 }
 0x154   :  { %1165 = vmatprep.subr.bf16.mxu0 %v1855_v52 }
 0x157   :  { %1166 = vmatpush1.bf16.msra.mxu0 %v1858_v53 }
 0x158   :  { %1167 = vmatprep.subr.bf16.mxu0 %v1861_v54 }
 0x15b   :  { %1168 = vmatpush1.bf16.msra.mxu0 %v1864_v55 }
 0x15c   :  { %1169 = vmatprep.subr.bf16.mxu0 %v1867_v56 }
 0x15f   :  { %1170 = vmatpush1.bf16.msra.mxu0 %v1870_v57 }
 0x160   :  { %1171 = vmatprep.subr.bf16.mxu0 %v1873_v58 }
 0x163   :  { %1172 = vmatpush1.bf16.msra.mxu0 %v1876_v59 }
 0x164   :  { %1173 = vmatprep.subr.bf16.mxu0 %v1879_v60 }
 0x167   :  { %1174 = vmatpush2.bf16.msra.mxu0 %v1882_v61 }
 0x168   :  { %1175 = vmatprep.subr.bf16.mxu0 %v1885_v62 }
 0x16b   :  { %1176 = vmatpush2.bf16.msra.mxu0 %v1888_v63 }
 0x16c   :  { %1177 = vmatprep.subr.bf16.mxu0 %v1891_v0 }
 0x16f   :  { %1178 = vmatpush2.bf16.msra.mxu0 %v1894_v1 }
 0x170   :  { %1179 = vmatprep.subr.bf16.mxu0 %v1897_v2 }
 0x173   :  { %1180 = vmatpush2.bf16.msra.mxu0 %v1900_v3 }
 0x174   :  { %1181 = vmatprep.subr.bf16.mxu0 %v1903_v4 }
 0x177   :  { %1182 = vmatpush2.bf16.msra.mxu0 %v1906_v5 }
 0x178   :  { %1183 = vmatprep.subr.bf16.mxu0 %v1935_v28 }
 0x17b   :  { %1184 = vmatpush2.bf16.msra.mxu0 %v1937_v29 }
 0x17c   :  { %1185 = vmatprep.subr.bf16.mxu0 %v1943_v30 }
 0x17f   :  { %1186 = vmatpush2.bf16.msra.mxu0 %v1945_v31 }
 0x180   :  { %1187 = vmatprep.subr.bf16.mxu0 %v1951_v32 }
 0x183   :  { %1188 = vmatpush2.bf16.msra.mxu0 %v1953_v33 }
 0x206   :  { %v1960_v34 = vpop.f32.mrf.mxu0 }
 0x207   :  { %v864_v39 = vmax.f32 %v1960_v34, 0.0 }
 0x208   :  { %v1962_v35 = vpop.f32.mrf.mxu0 }
 0x209   :  { %v865_v37 = vmax.f32 %v1962_v35, 0.0  ;;  %v872_v7 = vmin.f32 %v864_v39, 1.0 }
 0x20a   :  { %v1964_v36 = vpop.f32.mrf.mxu0 }
 0x20b   :  { %v866_v38 = vmax.f32 %v1964_v36, 0.0  ;;  %v873_v45 = vmin.f32 %v865_v37, 1.0 }
 0x20c   :  { %v1969_v40 = vpop.f32.mrf.mxu0 }
 0x20d   :  { %v867_v41 = vmax.f32 %v1969_v40, 0.0  ;;  %v874_v42 = vmin.f32 %v866_v38, 1.0 }
 0x20e   :  { %v1972_v43 = vpop.f32.mrf.mxu0 }
 0x20f   :  { %v875_v6 = vmin.f32 %v867_v41, 1.0  ;;  %v880_v10 = vpack.c.bf16 %v874_v42, %v872_v7  ;;  %v868_v14 = vmax.f32 %v1972_v43, 0.0 }
 0x210   :  { %v1974_v8 = vpop.f32.mrf.mxu0 }
 0x211   :  { %v881_v9 = vpack.c.bf16 %v875_v6, %v873_v45  ;;  %v869_v12 = vmax.f32 %v1974_v8, 0.0  ;;  %v876_v20 = vmin.f32 %v868_v14, 1.0 }
 0x212   :  { %v1976_v11 = vpop.f32.mrf.mxu0 }
 0x213   :  { %v870_v13 = vmax.f32 %v1976_v11, 0.0  ;;  %1108 = vmatprep.mubr.bf16.mxu1 %v881_v9  ;;  %v877_v18 = vmin.f32 %v869_v12, 1.0 }
 0x214   :  { %v1981_v15 = vpop.f32.mrf.mxu0  ;;  %1109 = vmatmul.mubr.bf16.vlgmr.msra.gmra.mxu1 %v880_v10 }
 0x215   :  { %v871_v16 = vmax.f32 %v1981_v15, 0.0  ;;  %1239 = vmatpush1.bf16.msra.mxu1 %v1831_v44  ;;  %v878_v17 = vmin.f32 %v870_v13, 1.0 }
 0x216   :  { %1240 = vmatprep.subr.bf16.mxu1 %v1835_v46 }
 0x217   :  { %v879_v19 = vmin.f32 %v871_v16, 1.0  ;;  %v882_v22 = vpack.c.bf16 %v878_v17, %v876_v20 }
 0x219   :  { %v883_v21 = vpack.c.bf16 %v879_v19, %v877_v18  ;;  %1241 = vmatpush1.bf16.msra.mxu1 %v1840_v47 }
 0x21a   :  { %1242 = vmatprep.subr.bf16.mxu1 %v1843_v48 }
 0x21b   :  { %1118 = vmatprep.mubr.bf16.mxu1 %v883_v21 }
 0x21c   :  { %1119 = vmatmul.mubr.bf16.gmra.mxu1 %v882_v22 }
 0x21d   :  { %1243 = vmatpush1.bf16.msra.mxu1 %v1846_v49 }
 0x21e   :  { %1244 = vmatprep.subr.bf16.mxu1 %v1849_v50 }
 0x221   :  { %1245 = vmatpush1.bf16.msra.mxu1 %v1852_v51 }
 0x222   :  { %1246 = vmatprep.subr.bf16.mxu1 %v1855_v52 }
 0x225   :  { %1247 = vmatpush1.bf16.msra.mxu1 %v1858_v53 }
 0x226   :  { %1248 = vmatprep.subr.bf16.mxu1 %v1861_v54 }
 0x229   :  { %1249 = vmatpush1.bf16.msra.mxu1 %v1864_v55 }
 0x22a   :  { %1250 = vmatprep.subr.bf16.mxu1 %v1867_v56 }
 0x22d   :  { %1251 = vmatpush1.bf16.msra.mxu1 %v1870_v57 }
 0x22e   :  { %1252 = vmatprep.subr.bf16.mxu1 %v1873_v58 }
 0x231   :  { %1253 = vmatpush1.bf16.msra.mxu1 %v1876_v59 }
 0x232   :  { %1254 = vmatprep.subr.bf16.mxu1 %v1879_v60 }
 0x235   :  { %1255 = vmatpush2.bf16.msra.mxu1 %v1882_v61 }
 0x236   :  { %1256 = vmatprep.subr.bf16.mxu1 %v1885_v62 }
 0x239   :  { %1257 = vmatpush2.bf16.msra.mxu1 %v1888_v63 }
 0x23a   :  { %1258 = vmatprep.subr.bf16.mxu1 %v1891_v0 }
 0x23d   :  { %1259 = vmatpush2.bf16.msra.mxu1 %v1894_v1 }
 0x23e   :  { %1260 = vmatprep.subr.bf16.mxu1 %v1897_v2 }
 0x241   :  { %1261 = vmatpush2.bf16.msra.mxu1 %v1900_v3 }
 0x242   :  { %1262 = vmatprep.subr.bf16.mxu1 %v1903_v4 }
 0x245   :  { %1263 = vmatpush2.bf16.msra.mxu1 %v1906_v5 }
 0x246   :  { %1264 = vmatprep.subr.bf16.mxu1 %v1935_v28 }
 0x249   :  { %1265 = vmatpush2.bf16.msra.mxu1 %v1937_v29 }
 0x24a   :  { %1266 = vmatprep.subr.bf16.mxu1 %v1943_v30 }
 0x24d   :  { %1267 = vmatpush2.bf16.msra.mxu1 %v1945_v31 }
 0x24e   :  { %1268 = vmatprep.subr.bf16.mxu1 %v1951_v32 }
 0x251   :  { %1269 = vmatpush2.bf16.msra.mxu1 %v1953_v33 }
 0x2d4   :  { %v1110_v44 = vpop.f32.mrf.mxu1 }
 0x2d5   :  { %v1129_v48 = vadd.f32 %v1110_v44, %v1960_v34 }
 0x2d6   :  { %v1112_v46 = vpop.f32.mrf.mxu1 }
 0x2d7   :  { %v1130_v47 = vadd.f32 %v1112_v46, %v1962_v35  ;;  %v1137_v55 = vmax.f32 %v1129_v48, 0.0 }
 0x2d8   :  { %v1114_v49 = vpop.f32.mrf.mxu1 }
 0x2d9   :  { %v1131_v50 = vadd.f32 %v1114_v49, %v1964_v36  ;;  %v1138_v52 = vmax.f32 %v1130_v47, 0.0  ;;  %v1145_v63 = vmin.f32 %v1137_v55, 1.0 }
 0x2da   :  { %v1116_v51 = vpop.f32.mrf.mxu1 }
 0x2db   :  { %v1139_v53 = vmax.f32 %v1131_v50, 0.0  ;;  %v1132_v54 = vadd.f32 %v1116_v51, %v1969_v40  ;;  %v1146_v60 = vmin.f32 %v1138_v52, 1.0 }
 0x2dc   :  { %v1120_v56 = vpop.f32.mrf.mxu1 }
 0x2dd   :  { %v1140_v57 = vmax.f32 %v1132_v54, 0.0  ;;  %v1147_v58 = vmin.f32 %v1139_v53, 1.0  ;;  %v1133_v0 = vadd.f32 %v1120_v56, %v1972_v43 }
 0x2de   :  { %v1122_v59 = vpop.f32.mrf.mxu1 }
 0x2df   :  { %v1148_v61 = vmin.f32 %v1140_v57, 1.0  ;;  %v1134_v62 = vadd.f32 %v1122_v59, %v1974_v8  ;;  %v1153_v4 = vpack.c.bf16 %v1147_v58, %v1145_v63  ;;  %v1141_v26 = vmax.f32 %v1133_v0, 0.0 }
 0x2e0   :  { %v1124_v1 = vpop.f32.mrf.mxu1 }
 0x2e1   :  { %v1154_v2 = vpack.c.bf16 %v1148_v61, %v1146_v60  ;;  %v1135_v3 = vadd.f32 %v1124_v1, %v1976_v11  ;;  %v1142_v23 = vmax.f32 %v1134_v62, 0.0  ;;  %v1149_v31 = vmin.f32 %v1141_v26, 1.0 }
 0x2e2   :  { %v1126_v5 = vpop.f32.mrf.mxu1 }
 0x2e3   :  { %v1143_v24 = vmax.f32 %v1135_v3, 0.0  ;;  %v1136_v25 = vadd.f32 %v1126_v5, %v1981_v15  ;;  %1189 = vmatprep.mubr.bf16.mxu0 %v1154_v2  ;;  %v1150_v29 = vmin.f32 %v1142_v23, 1.0 }
 0x2e4   :  { %1190 = vmatmul.mubr.bf16.vlgmr.msra.gmra.mxu0 %v1153_v4 }
 0x2e5   :  { %v1144_v27 = vmax.f32 %v1136_v25, 0.0  ;;  %v1151_v28 = vmin.f32 %v1143_v24, 1.0 }
 0x2e7   :  { %v1152_v30 = vmin.f32 %v1144_v27, 1.0  ;;  %v1155_v33 = vpack.c.bf16 %v1151_v28, %v1149_v31 }
 0x2e9   :  { %v1156_v32 = vpack.c.bf16 %v1152_v30, %v1150_v29 }
 0x2eb   :  { %1199 = vmatprep.mubr.bf16.mxu0 %v1156_v32 }
 0x2ec   :  { %1200 = vmatmul.mubr.bf16.gmra.mxu0 %v1155_v33 }
 0x3a4   :  { %v1191_v37 = vpop.f32.mrf.mxu0 }
 0x3a5   :  { %v1210_v41 = vadd.f32 %v1191_v37, %v1960_v34 }
 0x3a6   :  { %v1193_v38 = vpop.f32.mrf.mxu0 }
 0x3a7   :  { %v1211_v39 = vadd.f32 %v1193_v38, %v1962_v35  ;;  %v1218_v12 = vmax.f32 %v1210_v41, 0.0 }
 0x3a8   :  { %v1195_v42 = vpop.f32.mrf.mxu0 }
 0x3a9   :  { %v1212_v45 = vadd.f32 %v1195_v42, %v1964_v36  ;;  %v1219_v7 = vmax.f32 %v1211_v39, 0.0  ;;  %v1226_v21 = vmin.f32 %v1218_v12, 1.0 }
 0x3aa   :  { %v1197_v6 = vpop.f32.mrf.mxu0 }
 0x3ab   :  { %v1220_v9 = vmax.f32 %v1212_v45, 0.0  ;;  %v1213_v10 = vadd.f32 %v1197_v6, %v1969_v40  ;;  %v1227_v18 = vmin.f32 %v1219_v7, 1.0 }
 0x3ac   :  { %v1201_v13 = vpop.f32.mrf.mxu0 }
 0x3ad   :  { %v1221_v14 = vmax.f32 %v1213_v10, 0.0  ;;  %v1228_v16 = vmin.f32 %v1220_v9, 1.0  ;;  %v1214_v22 = vadd.f32 %v1201_v13, %v1972_v43 }
 0x3ae   :  { %v1203_v17 = vpop.f32.mrf.mxu0 }
 0x3af   :  { %v1229_v19 = vmin.f32 %v1221_v14, 1.0  ;;  %v1215_v20 = vadd.f32 %v1203_v17, %v1974_v8  ;;  %v1234_v48 = vpack.c.bf16 %v1228_v16, %v1226_v21  ;;  %v1222_v53 = vmax.f32 %v1214_v22, 0.0 }
 0x3b0   :  { %v1205_v44 = vpop.f32.mrf.mxu0 }
 0x3b1   :  { %v1235_v46 = vpack.c.bf16 %v1229_v19, %v1227_v18  ;;  %v1216_v47 = vadd.f32 %v1205_v44, %v1976_v11  ;;  %v1223_v50 = vmax.f32 %v1215_v20, 0.0  ;;  %v1230_v58 = vmin.f32 %v1222_v53, 1.0 }
 0x3b2   :  { %v1207_v49 = vpop.f32.mrf.mxu0 }
 0x3b3   :  { %v1224_v51 = vmax.f32 %v1216_v47, 0.0  ;;  %v1217_v52 = vadd.f32 %v1207_v49, %v1981_v15  ;;  %1270 = vmatprep.mubr.bf16.mxu1 %v1235_v46  ;;  %v1231_v56 = vmin.f32 %v1223_v50, 1.0 }
 0x3b4   :  { %1271 = vmatmul.mubr.bf16.vlgmr.msra.gmra.mxu1 %v1234_v48 }
 0x3b5   :  { %v1225_v54 = vmax.f32 %v1217_v52, 0.0  ;;  %v1232_v55 = vmin.f32 %v1224_v51, 1.0 }
 0x3b7   :  { %v1233_v57 = vmin.f32 %v1225_v54, 1.0  ;;  %v1236_v60 = vpack.c.bf16 %v1232_v55, %v1230_v58 }
 0x3b9   :  { %v1237_v59 = vpack.c.bf16 %v1233_v57, %v1231_v56 }
 0x3bb   :  { %1280 = vmatprep.mubr.bf16.mxu1 %v1237_v59 }
 0x3bc   :  { %1281 = vmatmul.mubr.bf16.gmra.mxu1 %v1236_v60 }
 0x474   :  { %v1272_v61 = vpop.f32.mrf.mxu1 }
 0x475   :  { %v1291_v62 = vadd.f32 %v1272_v61, %v1960_v34 }
 0x476   :  { %v1274_v63 = vpop.f32.mrf.mxu1 }
 0x477   :  { %v1299_v0 = vmax.f32 %v1291_v62, 0.0  ;;  %v1292_v1 = vadd.f32 %v1274_v63, %v1962_v35 }
 0x478   :  { %v1276_v2 = vpop.f32.mrf.mxu1 }
 0x479   :  { %v1307_v3 = vmin.f32 %v1299_v0, 1.0  ;;  %v1300_v4 = vmax.f32 %v1292_v1, 0.0  ;;  %v1293_v5 = vadd.f32 %v1276_v2, %v1964_v36 }
 0x47a   :  { %v1278_v23 = vpop.f32.mrf.mxu1 }
 0x47b   :  { %1315 = vst [vmem:[#allocation10] sm:$0xff] %v1307_v3  ;;  %v1308_v24 = vmin.f32 %v1300_v4, 1.0  ;;  %v1301_v25 = vmax.f32 %v1293_v5, 0.0  ;;  %v1294_v26 = vadd.f32 %v1278_v23, %v1969_v40 }
 0x47c   :  { %v1282_v27 = vpop.f32.mrf.mxu1 }
 0x47d   :  { %1316 = vst [vmem:[#allocation10 + $0x8] sm:$0xff] %v1308_v24  ;;  %v1309_v28 = vmin.f32 %v1301_v25, 1.0  ;;  %v1302_v29 = vmax.f32 %v1294_v26, 0.0  ;;  %v1295_v34 = vadd.f32 %v1282_v27, %v1972_v43 }
 0x47e   :  { %v1284_v30 = vpop.f32.mrf.mxu1 }
 0x47f   :  { %1317 = vst [vmem:[#allocation10 + $0x10] sm:$0xff] %v1309_v28  ;;  %v1310_v35 = vmin.f32 %v1302_v29, 1.0  ;;  %v1303_v31 = vmax.f32 %v1295_v34, 0.0  ;;  %v1296_v32 = vadd.f32 %v1284_v30, %v1974_v8 }
 0x480   :  { %v1286_v33 = vpop.f32.mrf.mxu1 }
 0x481   :  { %1318 = vst [vmem:[#allocation10 + $0x18] sm:$0xff] %v1310_v35  ;;  %v1311_v36 = vmin.f32 %v1303_v31, 1.0  ;;  %v1304_v37 = vmax.f32 %v1296_v32, 0.0  ;;  %v1297_v38 = vadd.f32 %v1286_v33, %v1976_v11 }
 0x482   :  { %v1288_v39 = vpop.f32.mrf.mxu1 }
 0x483   :  { %1319 = vst [vmem:[#allocation10 + $0x20] sm:$0xff] %v1311_v36  ;;  %v1312_v40 = vmin.f32 %v1304_v37, 1.0  ;;  %v1305_v41 = vmax.f32 %v1297_v38, 0.0  ;;  %v1298_v42 = vadd.f32 %v1288_v39, %v1981_v15 }
 0x485   :  { %1320 = vst [vmem:[#allocation10 + $0x28] sm:$0xff] %v1312_v40  ;;  %v1313_v43 = vmin.f32 %v1305_v41, 1.0  ;;  %v1306_v45 = vmax.f32 %v1298_v42, 0.0 }
 0x487   :  { %1321 = vst [vmem:[#allocation10 + $0x30] sm:$0xff] %v1313_v43  ;;  %v1314_v6 = vmin.f32 %v1306_v45, 1.0 }
 0x489   :  { %1322 = vst [vmem:[#allocation10 + $0x38] sm:$0xff] %v1314_v6 }
 0x48a   :  { %1762 = shalt.err (!%p1759_p10)
}
 0x48b   :  { %1334 = dma.vmem_to_hbm [thread:$0]  %s1329_s3, 1024, %s2049_s4, [#allocation4], %s1781_s20, %s1781_s20, %s1782_s21  }
 0x48c   :  { %1777 = dma.done.wait [#allocation4], 1024  }
 0x48d   :  { %1778 = vsyncadd [#allocation4], 4294966272 }
 0x48e   :  { %1338 = vsyncpa [#allocation3], 1 }
 0x48f   :  { %1339 = vsyncpa [#allocation6], 1 }
 0x490   :  { %1340 = vsyncpa [#allocation9], 1 }
 0x491   :  { %1341 = vsyncpa [#allocation4], 1 }

// kernel: tpu_custom_call.1
= control target key start
LH: loop header
LB: loop body
LE: loop exit
PB: predicated region body
PF: predicated region fallthrough
CT: control target
= control target key end

     0   :  { %9 = vsyncpa [#allocation3], 0  ;;  %s2045_s0 = inlined_call_operand.hbm [shape: f32[32,256], index: 0, kind: input, shape index: {}]   ;;  %s2046_s1 = inlined_call_operand.hbm [shape: bf16[256,512], index: 1, kind: input, shape index: {}]   ;;  %s2047_s2 = inlined_call_operand.hbm [shape: bf16[256,256], index: 2, kind: input, shape index: {}]   ;;  %s2048_s3 = inlined_call_operand.hbm [shape: bf16[256,256], index: 3, kind: input, shape index: {}]   ;;  %s2049_s4 = inlined_call_operand.hbm [shape: f32[32,256], index: 4, kind: output, shape index: {}]  }
   0x1   :  { %10 = vsyncpa [#allocation6], 0 }
   0x2   :  { %11 = vsyncpa [#allocation9], 0 }
   0x3   :  { %12 = vsyncpa [#allocation4], 0  ;;  %s1779_s15 = smov [#allocation5]   ;;  %s1780_s17 = smov [#allocation2]  }
   0x4   :  { %s30_s16 = sshll.u32 %s1779_s15, 4  ;;  %s18_s18 = sshll.u32 %s1780_s17, 4  ;;  %s31_s16 = int_to_ptr.vmem [resolvable:$true] %s30_s16  ;;  %s19_s18 = int_to_ptr.vmem [resolvable:$true] %s18_s18 }
   0x5   :  { %s1679_s19 = scalar_lea.vmem %s31_s16, 8192  ;;  %p1684_p1 = scmp.lt.s32.totalorder %s31_s16, %s31_s16 }
   0x6   :  { %p1680_p0 = scmp.ne.s32.totalorder %s31_s16, %s1679_s19  ;;  %p1685_p2 = scmp.lt.s32.totalorder %s1679_s19, %s1679_s19 }
   0x8   :  { %p1686_p3 = por %p1685_p2, %p1684_p1 }
   0xa   :  { %p1687_p4 = pnand %p1686_p3, %p1680_p0 }
   0xc   :  { %1690 = shalt.err (!%p1687_p4)
}
   0xd   :  { %s1781_s20 = smov 256   ;;  %s1782_s21 = smov 16  }
   0xe   :  { %36 = dma.hbm_to_vmem [thread:$0]  %s2046_s1, 8192, %s31_s16, [#allocation6], %s1781_s20, %s1781_s20, %s1782_s21  }
   0xf   :  { %s1699_s24 = scalar_lea.vmem %s19_s18, 1024  ;;  %p1704_p6 = scmp.lt.s32.totalorder %s19_s18, %s19_s18 }
  0x10   :  { %p1700_p5 = scmp.ne.s32.totalorder %s19_s18, %s1699_s24  ;;  %p1705_p7 = scmp.lt.s32.totalorder %s1699_s24, %s1699_s24 }
  0x12   :  { %p1706_p8 = por %p1705_p7, %p1704_p6 }
  0x14   :  { %p1707_p9 = pnand %p1706_p8, %p1700_p5 }
  0x16   :  { %1710 = shalt.err (!%p1707_p9)
}
  0x17   :  { %24 = dma.hbm_to_vmem [thread:$0]  %s2045_s0, 1024, %s19_s18, [#allocation3], %s1781_s20, %s1781_s20, %s1782_s21  }
  0x18   :  { %s1783_s27 = smov [#allocation7]  }
  0x19   :  { %s42_s28 = sshll.u32 %s1783_s27, 4  ;;  %s43_s28 = int_to_ptr.vmem [resolvable:$true] %s42_s28 }
  0x1a   :  { %s1719_s29 = scalar_lea.vmem %s43_s28, 4096  ;;  %p1724_p11 = scmp.lt.s32.totalorder %s43_s28, %s43_s28 }
  0x1b   :  { %p1720_p10 = scmp.ne.s32.totalorder %s43_s28, %s1719_s29  ;;  %p1725_p12 = scmp.lt.s32.totalorder %s1719_s29, %s1719_s29 }
  0x1d   :  { %p1726_p13 = por %p1725_p12, %p1724_p11 }
  0x1f   :  { %p1727_p0 = pnand %p1726_p13, %p1720_p10 }
  0x21   :  { %1730 = shalt.err (!%p1727_p0)
}
  0x22   :  { %s1784_s1 = smov 128   ;;  %s1785_s30 = smov 8  }
  0x23   :  { %48 = dma.hbm_to_vmem [thread:$0]  %s2047_s2, 4096, %s43_s28, [#allocation6], %s1784_s1, %s1784_s1, %s1785_s30  }
  0x24   :  { %s1786_s7 = smov [#allocation8]  }
  0x25   :  { %s54_s8 = sshll.u32 %s1786_s7, 4  ;;  %s55_s8 = int_to_ptr.vmem [resolvable:$true] %s54_s8 }
  0x26   :  { %s1739_s0 = scalar_lea.vmem %s55_s8, 4096  ;;  %p1744_p2 = scmp.lt.s32.totalorder %s55_s8, %s55_s8 }
  0x27   :  { %p1740_p1 = scmp.ne.s32.totalorder %s55_s8, %s1739_s0  ;;  %p1745_p3 = scmp.lt.s32.totalorder %s1739_s0, %s1739_s0 }
  0x29   :  { %p1746_p4 = por %p1745_p3, %p1744_p2 }
  0x2b   :  { %p1747_p5 = pnand %p1746_p4, %p1740_p1 }
  0x2d   :  { %1750 = shalt.err (!%p1747_p5)
}
  0x2e   :  { %60 = dma.hbm_to_vmem [thread:$0]  %s2048_s3, 4096, %s55_s8, [#allocation9], %s1784_s1, %s1784_s1, %s1785_s30  }
  0x2f   :  { %1771 = dma.done.wait [#allocation3], 1024  }
  0x30   :  { %1772 = vsyncadd [#allocation3], 4294966272 }
  0x31   :  { %1773 = dma.done.wait [#allocation6], 12288  }
  0x32   :  { %1774 = vsyncadd [#allocation6], 4294955008 }
  0x33   :  { %1775 = dma.done.wait [#allocation9], 4096  }
  0x34   :  { %1776 = vsyncadd [#allocation9], 4294963200  ;;  %v1479_v0 = vld [vmem:[#allocation5 + $0xe4] ss:$16 sps:$4 sm:$0xff]   ;;  %v1481_v1 = vld [vmem:[#allocation5 + $0xec] ss:$16 sps:$4 sm:$0xff]  }
  0x35   :  { %469 = vmatprep.subr.bf16.mxu0 %v1479_v0  ;;  %v1483_v2 = vld [vmem:[#allocation5 + $0xe0] ss:$16 sps:$4 sm:$0xff]   ;;  %v1484_v3 = vld [vmem:[#allocation5 + $0xe8] ss:$16 sps:$4 sm:$0xff]   ;;  %522 = vmatprep.subr.bf16.mxu1 %v1481_v1  ;;  %v1485_v4 = vld [vmem:[#allocation5 + $0xc4] ss:$16 sps:$4 sm:$0xff]  }
  0x36   :  { %470 = vmatpush1.bf16.msra.mxu0 %v1483_v2  ;;  %523 = vmatpush1.bf16.msra.mxu1 %v1484_v3  ;;  %v1487_v5 = vld [vmem:[#allocation5 + $0xcc] ss:$16 sps:$4 sm:$0xff]   ;;  %v1489_v6 = vld [vmem:[#allocation5 + $0xc0] ss:$16 sps:$4 sm:$0xff]   ;;  %v1490_v7 = vld [vmem:[#allocation5 + $0xc8] ss:$16 sps:$4 sm:$0xff]  }
  0x37   :  { %471 = vmatprep.subr.bf16.mxu0 %v1485_v4  ;;  %524 = vmatprep.subr.bf16.mxu1 %v1487_v5  ;;  %v1491_v8 = vld [vmem:[#allocation5 + $0xa4] ss:$16 sps:$4 sm:$0xff]   ;;  %v1493_v9 = vld [vmem:[#allocation5 + $0xac] ss:$16 sps:$4 sm:$0xff]   ;;  %v1495_v10 = vld [vmem:[#allocation5 + $0xa0] ss:$16 sps:$4 sm:$0xff]  }
  0x38   :  { %v1496_v11 = vld [vmem:[#allocation5 + $0xa8] ss:$16 sps:$4 sm:$0xff]   ;;  %v1497_v12 = vld [vmem:[#allocation5 + $0x84] ss:$16 sps:$4 sm:$0xff]   ;;  %v1499_v13 = vld [vmem:[#allocation5 + $0x8c] ss:$16 sps:$4 sm:$0xff]  }
  0x39   :  { %v1501_v14 = vld [vmem:[#allocation5 + $0x80] ss:$16 sps:$4 sm:$0xff]   ;;  %v1502_v15 = vld [vmem:[#allocation5 + $0x88] ss:$16 sps:$4 sm:$0xff]   ;;  %v1503_v16 = vld [vmem:[#allocation5 + $0x64] ss:$16 sps:$4 sm:$0xff]  }
  0x3a   :  { %472 = vmatpush1.bf16.msra.mxu0 %v1489_v6  ;;  %525 = vmatpush1.bf16.msra.mxu1 %v1490_v7  ;;  %v1505_v17 = vld [vmem:[#allocation5 + $0x6c] ss:$16 sps:$4 sm:$0xff]   ;;  %v1507_v18 = vld [vmem:[#allocation5 + $0x60] ss:$16 sps:$4 sm:$0xff]   ;;  %v1508_v19 = vld [vmem:[#allocation5 + $0x68] ss:$16 sps:$4 sm:$0xff]  }
  0x3b   :  { %473 = vmatprep.subr.bf16.mxu0 %v1491_v8  ;;  %526 = vmatprep.subr.bf16.mxu1 %v1493_v9  ;;  %v1509_v20 = vld [vmem:[#allocation5 + $0x44] ss:$16 sps:$4 sm:$0xff]   ;;  %v1511_v21 = vld [vmem:[#allocation5 + $0x4c] ss:$16 sps:$4 sm:$0xff]   ;;  %v1513_v22 = vld [vmem:[#allocation5 + $0x40] ss:$16 sps:$4 sm:$0xff]  }
  0x3c   :  { %v1514_v23 = vld [vmem:[#allocation5 + $0x48] ss:$16 sps:$4 sm:$0xff]   ;;  %v1515_v24 = vld [vmem:[#allocation5 + $0x24] ss:$16 sps:$4 sm:$0xff]   ;;  %v1517_v25 = vld [vmem:[#allocation5 + $0x2c] ss:$16 sps:$4 sm:$0xff]  }
  0x3d   :  { %v1519_v26 = vld [vmem:[#allocation5 + $0x20] ss:$16 sps:$4 sm:$0xff]   ;;  %v1520_v27 = vld [vmem:[#allocation5 + $0x28] ss:$16 sps:$4 sm:$0xff]   ;;  %v1521_v28 = vld [vmem:[#allocation5 + $0x4] ss:$16 sps:$4 sm:$0xff]  }
  0x3e   :  { %474 = vmatpush1.bf16.msra.mxu0 %v1495_v10  ;;  %527 = vmatpush1.bf16.msra.mxu1 %v1496_v11  ;;  %v1523_v29 = vld [vmem:[#allocation5 + $0xc] ss:$16 sps:$4 sm:$0xff]   ;;  %v1525_v30 = vld [vmem:[#allocation5] ss:$16 sps:$4 sm:$0xff]   ;;  %v1526_v31 = vld [vmem:[#allocation5 + $0x8] ss:$16 sps:$4 sm:$0xff]  }
  0x3f   :  { %475 = vmatprep.subr.bf16.mxu0 %v1497_v12  ;;  %528 = vmatprep.subr.bf16.mxu1 %v1499_v13  ;;  %v1527_v32 = vld [vmem:[#allocation5 + $0x1e4] ss:$16 sps:$4 sm:$0xff]   ;;  %v1529_v33 = vld [vmem:[#allocation5 + $0x1ec] ss:$16 sps:$4 sm:$0xff]   ;;  %v1531_v34 = vld [vmem:[#allocation5 + $0x1e0] ss:$16 sps:$4 sm:$0xff]  }
  0x40   :  { %v1532_v35 = vld [vmem:[#allocation5 + $0x1e8] ss:$16 sps:$4 sm:$0xff]   ;;  %v1533_v36 = vld [vmem:[#allocation5 + $0x1c4] ss:$16 sps:$4 sm:$0xff]   ;;  %v1535_v37 = vld [vmem:[#allocation5 + $0x1cc] ss:$16 sps:$4 sm:$0xff]  }
  0x41   :  { %v1537_v38 = vld [vmem:[#allocation5 + $0x1c0] ss:$16 sps:$4 sm:$0xff]   ;;  %v1538_v39 = vld [vmem:[#allocation5 + $0x1c8] ss:$16 sps:$4 sm:$0xff]   ;;  %v1539_v40 = vld [vmem:[#allocation5 + $0x1a4] ss:$16 sps:$4 sm:$0xff]  }
  0x42   :  { %476 = vmatpush1.bf16.msra.mxu0 %v1501_v14  ;;  %529 = vmatpush1.bf16.msra.mxu1 %v1502_v15  ;;  %v1541_v41 = vld [vmem:[#allocation5 + $0x1ac] ss:$16 sps:$4 sm:$0xff]   ;;  %v1543_v42 = vld [vmem:[#allocation5 + $0x1a0] ss:$16 sps:$4 sm:$0xff]   ;;  %v1544_v43 = vld [vmem:[#allocation5 + $0x1a8] ss:$16 sps:$4 sm:$0xff]  }
  0x43   :  { %477 = vmatprep.subr.bf16.mxu0 %v1503_v16  ;;  %530 = vmatprep.subr.bf16.mxu1 %v1505_v17  ;;  %v1545_v44 = vld [vmem:[#allocation5 + $0x184] ss:$16 sps:$4 sm:$0xff]   ;;  %v1547_v45 = vld [vmem:[#allocation5 + $0x18c] ss:$16 sps:$4 sm:$0xff]   ;;  %v1549_v48 = vld [vmem:[#allocation5 + $0x180] ss:$16 sps:$4 sm:$0xff]  }
  0x44   :  { %v74_v46 = vld [vmem:[#allocation2 + $0x8] sm:$0xff]  ;;  %v76_v47 = vld [vmem:[#allocation2 + $0x18] sm:$0xff]  ;;  %v1551_v50 = vld [vmem:[#allocation5 + $0x164] ss:$16 sps:$4 sm:$0xff]   ;;  %s1787_s2 = smov [#allocation10]  }
  0x45   :  { %v1550_v49 = vld [vmem:[#allocation5 + $0x188] ss:$16 sps:$4 sm:$0xff]   ;;  %v82_v51 = vpack.c.bf16 %v76_v47, %v74_v46  ;;  %v1553_v52 = vld [vmem:[#allocation5 + $0x16c] ss:$16 sps:$4 sm:$0xff]   ;;  %v1555_v53 = vld [vmem:[#allocation5 + $0x160] ss:$16 sps:$4 sm:$0xff]  }
  0x46   :  { %478 = vmatpush1.bf16.msra.mxu0 %v1507_v18  ;;  %531 = vmatpush1.bf16.msra.mxu1 %v1508_v19  ;;  %v1556_v54 = vld [vmem:[#allocation5 + $0x168] ss:$16 sps:$4 sm:$0xff]   ;;  %v1557_v55 = vld [vmem:[#allocation5 + $0x144] ss:$16 sps:$4 sm:$0xff]   ;;  %v1559_v56 = vld [vmem:[#allocation5 + $0x14c] ss:$16 sps:$4 sm:$0xff]  }
  0x47   :  { %479 = vmatprep.subr.bf16.mxu0 %v1509_v20  ;;  %532 = vmatprep.subr.bf16.mxu1 %v1511_v21  ;;  %v1561_v57 = vld [vmem:[#allocation5 + $0x140] ss:$16 sps:$4 sm:$0xff]   ;;  %v1562_v58 = vld [vmem:[#allocation5 + $0x148] ss:$16 sps:$4 sm:$0xff]   ;;  %v1563_v59 = vld [vmem:[#allocation5 + $0x124] ss:$16 sps:$4 sm:$0xff]  }
  0x48   :  { %501 = vmatprep.mubr.bf16.mxu0 %v82_v51  ;;  %554 = vmatprep.mubr.bf16.mxu1 %v82_v51  ;;  %v1565_v60 = vld [vmem:[#allocation5 + $0x12c] ss:$16 sps:$4 sm:$0xff]   ;;  %v1567_v61 = vld [vmem:[#allocation5 + $0x120] ss:$16 sps:$4 sm:$0xff]   ;;  %v1568_v62 = vld [vmem:[#allocation5 + $0x128] ss:$16 sps:$4 sm:$0xff]  }
  0x49   :  { %v1569_v63 = vld [vmem:[#allocation5 + $0x104] ss:$16 sps:$4 sm:$0xff]   ;;  %v1571_v0 = vld [vmem:[#allocation5 + $0x10c] ss:$16 sps:$4 sm:$0xff]   ;;  %v1573_v1 = vld [vmem:[#allocation5 + $0x100] ss:$16 sps:$4 sm:$0xff]  }
  0x4a   :  { %480 = vmatpush1.bf16.msra.mxu0 %v1513_v22  ;;  %533 = vmatpush1.bf16.msra.mxu1 %v1514_v23  ;;  %v1574_v2 = vld [vmem:[#allocation5 + $0x108] ss:$16 sps:$4 sm:$0xff]   ;;  %v73_v3 = vld [vmem:[#allocation2] sm:$0xff]  ;;  %v75_v4 = vld [vmem:[#allocation2 + $0x10] sm:$0xff]  ;;  %s1328_s3 = sshll.u32 %s1787_s2, 4  ;;  %s1329_s3 = int_to_ptr.vmem [resolvable:$true] %s1328_s3 }
  0x4b   :  { %481 = vmatprep.subr.bf16.mxu0 %v1515_v24  ;;  %534 = vmatprep.subr.bf16.mxu1 %v1517_v25  ;;  %v78_v5 = vld [vmem:[#allocation2 + $0x28] sm:$0xff]  ;;  %v80_v6 = vld [vmem:[#allocation2 + $0x38] sm:$0xff]  ;;  %v81_v8 = vpack.c.bf16 %v75_v4, %v73_v3  ;;  %v77_v12 = vld [vmem:[#allocation2 + $0x20] sm:$0xff]  ;;  %s1751_s11 = scalar_lea.vmem %s1329_s3, 1024  ;;  %p1756_p7 = scmp.lt.s32.totalorder %s1329_s3, %s1329_s3 }
  0x4c   :  { %v1577_v7 = vld [vmem:[#allocation7 + $0x74] ss:$8 sps:$4 sm:$0xff]   ;;  %v1575_v9 = vld [vmem:[#allocation7 + $0x70] ss:$8 sps:$4 sm:$0xff]   ;;  %v84_v10 = vpack.c.bf16 %v80_v6, %v78_v5  ;;  %v1580_v11 = vld [vmem:[#allocation7 + $0x64] ss:$8 sps:$4 sm:$0xff]   ;;  %p1752_p6 = scmp.ne.s32.totalorder %s1329_s3, %s1751_s11  ;;  %p1757_p8 = scmp.lt.s32.totalorder %s1751_s11, %s1751_s11 }
  0x4d   :  { %v79_v13 = vld [vmem:[#allocation2 + $0x30] sm:$0xff]  ;;  %v1578_v14 = vld [vmem:[#allocation7 + $0x60] ss:$8 sps:$4 sm:$0xff]   ;;  %v1586_v18 = vld [vmem:[#allocation7 + $0x44] ss:$8 sps:$4 sm:$0xff]  }
  0x4e   :  { %482 = vmatpush1.bf16.msra.mxu0 %v1519_v26  ;;  %535 = vmatpush1.bf16.msra.mxu1 %v1520_v27  ;;  %v1583_v15 = vld [vmem:[#allocation7 + $0x54] ss:$8 sps:$4 sm:$0xff]   ;;  %v83_v16 = vpack.c.bf16 %v79_v13, %v77_v12  ;;  %v1581_v17 = vld [vmem:[#allocation7 + $0x50] ss:$8 sps:$4 sm:$0xff]   ;;  %v1584_v19 = vld [vmem:[#allocation7 + $0x40] ss:$8 sps:$4 sm:$0xff]   ;;  %p1758_p9 = por %p1757_p8, %p1756_p7 }
  0x4f   :  { %483 = vmatprep.subr.bf16.mxu0 %v1521_v28  ;;  %536 = vmatprep.subr.bf16.mxu1 %v1523_v29  ;;  %v1589_v20 = vld [vmem:[#allocation7 + $0x34] ss:$8 sps:$4 sm:$0xff]   ;;  %v1587_v21 = vld [vmem:[#allocation7 + $0x30] ss:$8 sps:$4 sm:$0xff]   ;;  %v1592_v22 = vld [vmem:[#allocation7 + $0x24] ss:$8 sps:$4 sm:$0xff]  }
  0x50   :  { %v1590_v23 = vld [vmem:[#allocation7 + $0x20] ss:$8 sps:$4 sm:$0xff]   ;;  %v1595_v24 = vld [vmem:[#allocation7 + $0x14] ss:$8 sps:$4 sm:$0xff]   ;;  %v1593_v25 = vld [vmem:[#allocation7 + $0x10] ss:$8 sps:$4 sm:$0xff]   ;;  %p1759_p10 = pnand %p1758_p9, %p1752_p6 }
  0x51   :  { %v1598_v26 = vld [vmem:[#allocation7 + $0x4] ss:$8 sps:$4 sm:$0xff]   ;;  %v1596_v27 = vld [vmem:[#allocation7] ss:$8 sps:$4 sm:$0xff]   ;;  %v1601_v28 = vld [vmem:[#allocation7 + $0xf4] ss:$8 sps:$4 sm:$0xff]  }
  0x52   :  { %484 = vmatpush1.bf16.msra.mxu0 %v1525_v30  ;;  %537 = vmatpush1.bf16.msra.mxu1 %v1526_v31  ;;  %v1599_v29 = vld [vmem:[#allocation7 + $0xf0] ss:$8 sps:$4 sm:$0xff]   ;;  %v1604_v30 = vld [vmem:[#allocation7 + $0xe4] ss:$8 sps:$4 sm:$0xff]   ;;  %v1602_v31 = vld [vmem:[#allocation7 + $0xe0] ss:$8 sps:$4 sm:$0xff]  }
  0x53   :  { %485 = vmatprep.subr.bf16.mxu0 %v1527_v32  ;;  %538 = vmatprep.subr.bf16.mxu1 %v1529_v33  ;;  %v1607_v32 = vld [vmem:[#allocation7 + $0xd4] ss:$8 sps:$4 sm:$0xff]   ;;  %v1605_v33 = vld [vmem:[#allocation7 + $0xd0] ss:$8 sps:$4 sm:$0xff]   ;;  %v1835_v46 = vld [vmem:[#allocation8 + $0x64] ss:$8 sps:$4 sm:$0xff]  }
  0x54   :  { %v1840_v47 = vld [vmem:[#allocation8 + $0x60] ss:$8 sps:$4 sm:$0xff]   ;;  %v1903_v4 = vld [vmem:[#allocation8 + $0xb4] ss:$8 sps:$4 sm:$0xff]   ;;  %v1906_v5 = vld [vmem:[#allocation8 + $0xb0] ss:$8 sps:$4 sm:$0xff]  }
  0x55   :  { %v1852_v51 = vld [vmem:[#allocation8 + $0x40] ss:$8 sps:$4 sm:$0xff]  }
  0x56   :  { %486 = vmatpush2.bf16.msra.mxu0 %v1531_v34  ;;  %539 = vmatpush2.bf16.msra.mxu1 %v1532_v35  ;;  %v1610_v34 = vld [vmem:[#allocation7 + $0xc4] ss:$8 sps:$4 sm:$0xff]   ;;  %v1608_v35 = vld [vmem:[#allocation7 + $0xc0] ss:$8 sps:$4 sm:$0xff]  }
  0x57   :  { %487 = vmatprep.subr.bf16.mxu0 %v1533_v36  ;;  %540 = vmatprep.subr.bf16.mxu1 %v1535_v37  ;;  %v1613_v36 = vld [vmem:[#allocation7 + $0xb4] ss:$8 sps:$4 sm:$0xff]   ;;  %v1611_v37 = vld [vmem:[#allocation7 + $0xb0] ss:$8 sps:$4 sm:$0xff]   ;;  %v1900_v3 = vld [vmem:[#allocation8 + $0xc0] ss:$8 sps:$4 sm:$0xff]  }
  0x5a   :  { %488 = vmatpush2.bf16.msra.mxu0 %v1537_v38  ;;  %541 = vmatpush2.bf16.msra.mxu1 %v1538_v39  ;;  %v1616_v38 = vld [vmem:[#allocation7 + $0xa4] ss:$8 sps:$4 sm:$0xff]   ;;  %v1614_v39 = vld [vmem:[#allocation7 + $0xa0] ss:$8 sps:$4 sm:$0xff]  }
  0x5b   :  { %489 = vmatprep.subr.bf16.mxu0 %v1539_v40  ;;  %542 = vmatprep.subr.bf16.mxu1 %v1541_v41  ;;  %v1619_v40 = vld [vmem:[#allocation7 + $0x94] ss:$8 sps:$4 sm:$0xff]   ;;  %v1617_v41 = vld [vmem:[#allocation7 + $0x90] ss:$8 sps:$4 sm:$0xff]  }
  0x5e   :  { %490 = vmatpush2.bf16.msra.mxu0 %v1543_v42  ;;  %543 = vmatpush2.bf16.msra.mxu1 %v1544_v43  ;;  %v1622_v42 = vld [vmem:[#allocation7 + $0x84] ss:$8 sps:$4 sm:$0xff]   ;;  %v1620_v43 = vld [vmem:[#allocation7 + $0x80] ss:$8 sps:$4 sm:$0xff]  }
  0x5f   :  { %491 = vmatprep.subr.bf16.mxu0 %v1545_v44  ;;  %544 = vmatprep.subr.bf16.mxu1 %v1547_v45  ;;  %v1831_v44 = vld [vmem:[#allocation8 + $0x70] ss:$8 sps:$4 sm:$0xff]   ;;  %v1833_v45 = vld [vmem:[#allocation8 + $0x74] ss:$8 sps:$4 sm:$0xff]  }
  0x62   :  { %492 = vmatpush2.bf16.msra.mxu0 %v1549_v48  ;;  %545 = vmatpush2.bf16.msra.mxu1 %v1550_v49  ;;  %v1843_v48 = vld [vmem:[#allocation8 + $0x54] ss:$8 sps:$4 sm:$0xff]   ;;  %v1846_v49 = vld [vmem:[#allocation8 + $0x50] ss:$8 sps:$4 sm:$0xff]  }
  0x63   :  { %493 = vmatprep.subr.bf16.mxu0 %v1551_v50  ;;  %546 = vmatprep.subr.bf16.mxu1 %v1553_v52  ;;  %v1849_v50 = vld [vmem:[#allocation8 + $0x44] ss:$8 sps:$4 sm:$0xff]   ;;  %v1855_v52 = vld [vmem:[#allocation8 + $0x34] ss:$8 sps:$4 sm:$0xff]  }
  0x66   :  { %494 = vmatpush2.bf16.msra.mxu0 %v1555_v53  ;;  %547 = vmatpush2.bf16.msra.mxu1 %v1556_v54  ;;  %v1858_v53 = vld [vmem:[#allocation8 + $0x30] ss:$8 sps:$4 sm:$0xff]   ;;  %v1861_v54 = vld [vmem:[#allocation8 + $0x24] ss:$8 sps:$4 sm:$0xff]  }
  0x67   :  { %495 = vmatprep.subr.bf16.mxu0 %v1557_v55  ;;  %548 = vmatprep.subr.bf16.mxu1 %v1559_v56  ;;  %v1864_v55 = vld [vmem:[#allocation8 + $0x20] ss:$8 sps:$4 sm:$0xff]   ;;  %v1867_v56 = vld [vmem:[#allocation8 + $0x14] ss:$8 sps:$4 sm:$0xff]  }
  0x6a   :  { %496 = vmatpush2.bf16.msra.mxu0 %v1561_v57  ;;  %549 = vmatpush2.bf16.msra.mxu1 %v1562_v58  ;;  %v1870_v57 = vld [vmem:[#allocation8 + $0x10] ss:$8 sps:$4 sm:$0xff]   ;;  %v1873_v58 = vld [vmem:[#allocation8 + $0x4] ss:$8 sps:$4 sm:$0xff]  }
  0x6b   :  { %497 = vmatprep.subr.bf16.mxu0 %v1563_v59  ;;  %550 = vmatprep.subr.bf16.mxu1 %v1565_v60  ;;  %v1876_v59 = vld [vmem:[#allocation8] ss:$8 sps:$4 sm:$0xff]   ;;  %v1879_v60 = vld [vmem:[#allocation8 + $0xf4] ss:$8 sps:$4 sm:$0xff]  }
  0x6e   :  { %498 = vmatpush2.bf16.msra.mxu0 %v1567_v61  ;;  %551 = vmatpush2.bf16.msra.mxu1 %v1568_v62  ;;  %v1882_v61 = vld [vmem:[#allocation8 + $0xf0] ss:$8 sps:$4 sm:$0xff]   ;;  %v1885_v62 = vld [vmem:[#allocation8 + $0xe4] ss:$8 sps:$4 sm:$0xff]  }
  0x6f   :  { %499 = vmatprep.subr.bf16.mxu0 %v1569_v63  ;;  %552 = vmatprep.subr.bf16.mxu1 %v1571_v0  ;;  %v1888_v63 = vld [vmem:[#allocation8 + $0xe0] ss:$8 sps:$4 sm:$0xff]   ;;  %v1891_v0 = vld [vmem:[#allocation8 + $0xd4] ss:$8 sps:$4 sm:$0xff]  }
  0x72   :  { %500 = vmatpush2.bf16.msra.mxu0 %v1573_v1  ;;  %553 = vmatpush2.bf16.msra.mxu1 %v1574_v2  ;;  %v1894_v1 = vld [vmem:[#allocation8 + $0xd0] ss:$8 sps:$4 sm:$0xff]   ;;  %v1897_v2 = vld [vmem:[#allocation8 + $0xc4] ss:$8 sps:$4 sm:$0xff]  }
  0x73   :  { %811 = vmatprep.subr.bf16.mxu0 %v1577_v7  ;;  %1076 = vmatprep.subr.bf16.mxu1 %v1833_v45 }
  0x75   :  { %502 = vmatmul.mubr.bf16.vlgmr.msra.gmra.mxu0 %v81_v8  ;;  %555 = vmatmul.mubr.bf16.vlgmr.msra.gmra.mxu1 %v81_v8 }
  0x76   :  { %511 = vmatprep.mubr.bf16.mxu0 %v84_v10  ;;  %564 = vmatprep.mubr.bf16.mxu1 %v84_v10 }
  0x77   :  { %812 = vmatpush1.bf16.msra.mxu0 %v1575_v9  ;;  %1077 = vmatpush1.bf16.msra.mxu1 %v1831_v44 }
  0x78   :  { %813 = vmatprep.subr.bf16.mxu0 %v1580_v11  ;;  %1078 = vmatprep.subr.bf16.mxu1 %v1835_v46 }
  0x7b   :  { %814 = vmatpush1.bf16.msra.mxu0 %v1578_v14  ;;  %1079 = vmatpush1.bf16.msra.mxu1 %v1840_v47 }
  0x7c   :  { %815 = vmatprep.subr.bf16.mxu0 %v1583_v15  ;;  %1080 = vmatprep.subr.bf16.mxu1 %v1843_v48 }
  0x7d   :  { %512 = vmatmul.mubr.bf16.gmra.mxu0 %v83_v16  ;;  %565 = vmatmul.mubr.bf16.gmra.mxu1 %v83_v16 }
  0x7f   :  { %816 = vmatpush1.bf16.msra.mxu0 %v1581_v17  ;;  %1081 = vmatpush1.bf16.msra.mxu1 %v1846_v49 }
  0x80   :  { %817 = vmatprep.subr.bf16.mxu0 %v1586_v18  ;;  %1082 = vmatprep.subr.bf16.mxu1 %v1849_v50 }
  0x83   :  { %818 = vmatpush1.bf16.msra.mxu0 %v1584_v19  ;;  %1083 = vmatpush1.bf16.msra.mxu1 %v1852_v51 }
  0x84   :  { %819 = vmatprep.subr.bf16.mxu0 %v1589_v20  ;;  %1084 = vmatprep.subr.bf16.mxu1 %v1855_v52 }
  0x87   :  { %820 = vmatpush1.bf16.msra.mxu0 %v1587_v21  ;;  %1085 = vmatpush1.bf16.msra.mxu1 %v1858_v53 }
  0x88   :  { %821 = vmatprep.subr.bf16.mxu0 %v1592_v22  ;;  %1086 = vmatprep.subr.bf16.mxu1 %v1861_v54 }
  0x8b   :  { %822 = vmatpush1.bf16.msra.mxu0 %v1590_v23  ;;  %1087 = vmatpush1.bf16.msra.mxu1 %v1864_v55 }
  0x8c   :  { %823 = vmatprep.subr.bf16.mxu0 %v1595_v24  ;;  %1088 = vmatprep.subr.bf16.mxu1 %v1867_v56 }
  0x8f   :  { %824 = vmatpush1.bf16.msra.mxu0 %v1593_v25  ;;  %1089 = vmatpush1.bf16.msra.mxu1 %v1870_v57 }
  0x90   :  { %825 = vmatprep.subr.bf16.mxu0 %v1598_v26  ;;  %1090 = vmatprep.subr.bf16.mxu1 %v1873_v58 }
  0x93   :  { %826 = vmatpush1.bf16.msra.mxu0 %v1596_v27  ;;  %1091 = vmatpush1.bf16.msra.mxu1 %v1876_v59 }
  0x94   :  { %827 = vmatprep.subr.bf16.mxu0 %v1601_v28  ;;  %1092 = vmatprep.subr.bf16.mxu1 %v1879_v60 }
  0x97   :  { %828 = vmatpush2.bf16.msra.mxu0 %v1599_v29  ;;  %1093 = vmatpush2.bf16.msra.mxu1 %v1882_v61 }
  0x98   :  { %829 = vmatprep.subr.bf16.mxu0 %v1604_v30  ;;  %1094 = vmatprep.subr.bf16.mxu1 %v1885_v62 }
  0x9b   :  { %830 = vmatpush2.bf16.msra.mxu0 %v1602_v31  ;;  %1095 = vmatpush2.bf16.msra.mxu1 %v1888_v63 }
  0x9c   :  { %831 = vmatprep.subr.bf16.mxu0 %v1607_v32  ;;  %1096 = vmatprep.subr.bf16.mxu1 %v1891_v0 }
  0x9f   :  { %832 = vmatpush2.bf16.msra.mxu0 %v1605_v33  ;;  %1097 = vmatpush2.bf16.msra.mxu1 %v1894_v1 }
  0xa0   :  { %833 = vmatprep.subr.bf16.mxu0 %v1610_v34  ;;  %1098 = vmatprep.subr.bf16.mxu1 %v1897_v2 }
  0xa3   :  { %834 = vmatpush2.bf16.msra.mxu0 %v1608_v35  ;;  %1099 = vmatpush2.bf16.msra.mxu1 %v1900_v3 }
  0xa4   :  { %835 = vmatprep.subr.bf16.mxu0 %v1613_v36  ;;  %1100 = vmatprep.subr.bf16.mxu1 %v1903_v4 }
  0xa7   :  { %836 = vmatpush2.bf16.msra.mxu0 %v1611_v37  ;;  %1101 = vmatpush2.bf16.msra.mxu1 %v1906_v5 }
  0xa8   :  { %837 = vmatprep.subr.bf16.mxu0 %v1616_v38 }
  0xab   :  { %838 = vmatpush2.bf16.msra.mxu0 %v1614_v39 }
  0xac   :  { %839 = vmatprep.subr.bf16.mxu0 %v1619_v40 }
  0xaf   :  { %840 = vmatpush2.bf16.msra.mxu0 %v1617_v41 }
  0xb0   :  { %841 = vmatprep.subr.bf16.mxu0 %v1622_v42 }
  0xb3   :  { %842 = vmatpush2.bf16.msra.mxu0 %v1620_v43 }
  0xb4   :  { %1157 = vmatprep.subr.bf16.mxu0 %v1833_v45 }
 0x135   :  { %v503_v6 = vpop.f32.mrf.mxu0  ;;  %v556_v7 = vpop.f32.mrf.mxu1 }
 0x136   :  { %v575_v10 = vmax.f32 %v503_v6, 0.0  ;;  %v591_v11 = vmax.f32 %v556_v7, 0.0 }
 0x137   :  { %v505_v8 = vpop.f32.mrf.mxu0  ;;  %v558_v9 = vpop.f32.mrf.mxu1 }
 0x138   :  { %v576_v12 = vmax.f32 %v505_v8, 0.0  ;;  %v592_v13 = vmax.f32 %v558_v9, 0.0  ;;  %v583_v20 = vmin.f32 %v575_v10, 1.0  ;;  %v599_v24 = vmin.f32 %v591_v11, 1.0 }
 0x139   :  { %v507_v14 = vpop.f32.mrf.mxu0  ;;  %v560_v15 = vpop.f32.mrf.mxu1 }
 0x13a   :  { %v577_v16 = vmax.f32 %v507_v14, 0.0  ;;  %v593_v17 = vmax.f32 %v560_v15, 0.0  ;;  %v584_v25 = vmin.f32 %v576_v12, 1.0  ;;  %v600_v26 = vmin.f32 %v592_v13, 1.0 }
 0x13b   :  { %v509_v18 = vpop.f32.mrf.mxu0  ;;  %v562_v19 = vpop.f32.mrf.mxu1  ;;  %v607_v37 = vadd.f32 %v599_v24, %v583_v20 }
 0x13c   :  { %v585_v21 = vmin.f32 %v577_v16, 1.0  ;;  %v578_v22 = vmax.f32 %v509_v18, 0.0  ;;  %v594_v23 = vmax.f32 %v562_v19, 0.0  ;;  %v601_v27 = vmin.f32 %v593_v17, 1.0 }
 0x13d   :  { %v513_v28 = vpop.f32.mrf.mxu0  ;;  %v566_v29 = vpop.f32.mrf.mxu1  ;;  %v608_v38 = vadd.f32 %v600_v26, %v584_v25 }
 0x13e   :  { %v586_v30 = vmin.f32 %v578_v22, 1.0  ;;  %v602_v31 = vmin.f32 %v594_v23, 1.0  ;;  %v609_v32 = vadd.f32 %v601_v27, %v585_v21  ;;  %v579_v42 = vmax.f32 %v513_v28, 0.0  ;;  %v1935_v28 = vld [vmem:[#allocation8 + $0xa4] ss:$8 sps:$4 sm:$0xff]  }
 0x13f   :  { %v515_v33 = vpop.f32.mrf.mxu0  ;;  %v568_v34 = vpop.f32.mrf.mxu1  ;;  %v595_v43 = vmax.f32 %v566_v29, 0.0  ;;  %v1937_v29 = vld [vmem:[#allocation8 + $0xa0] ss:$8 sps:$4 sm:$0xff]   ;;  %1102 = vmatprep.subr.bf16.mxu1 %v1935_v28 }
 0x140   :  { %v610_v35 = vadd.f32 %v602_v31, %v586_v30  ;;  %v580_v36 = vmax.f32 %v515_v33, 0.0  ;;  %v596_v39 = vmax.f32 %v568_v34, 0.0  ;;  %v615_v8 = vpack.c.bf16 %v609_v32, %v607_v37  ;;  %1103 = vmatpush2.bf16.msra.mxu1 %v1937_v29  ;;  %v1943_v30 = vld [vmem:[#allocation8 + $0x94] ss:$8 sps:$4 sm:$0xff]   ;;  %v1945_v31 = vld [vmem:[#allocation8 + $0x90] ss:$8 sps:$4 sm:$0xff]  }
 0x141   :  { %v517_v40 = vpop.f32.mrf.mxu0  ;;  %v570_v41 = vpop.f32.mrf.mxu1  ;;  %v587_v18 = vmin.f32 %v579_v42, 1.0  ;;  %v603_v19 = vmin.f32 %v595_v43, 1.0  ;;  %1104 = vmatprep.subr.bf16.mxu1 %v1943_v30  ;;  %v1951_v32 = vld [vmem:[#allocation8 + $0x84] ss:$8 sps:$4 sm:$0xff]   ;;  %v1953_v33 = vld [vmem:[#allocation8 + $0x80] ss:$8 sps:$4 sm:$0xff]  }
 0x142   :  { %v581_v6 = vmax.f32 %v517_v40, 0.0  ;;  %v597_v7 = vmax.f32 %v570_v41, 0.0  ;;  %v588_v9 = vmin.f32 %v580_v36, 1.0  ;;  %v604_v10 = vmin.f32 %v596_v39, 1.0 }
 0x143   :  { %v519_v11 = vpop.f32.mrf.mxu0  ;;  %v572_v12 = vpop.f32.mrf.mxu1  ;;  %v616_v13 = vpack.c.bf16 %v610_v35, %v608_v38  ;;  %v611_v25 = vadd.f32 %v603_v19, %v587_v18 }
 0x144   :  { %v589_v14 = vmin.f32 %v581_v6, 1.0  ;;  %v605_v15 = vmin.f32 %v597_v7, 1.0  ;;  %v582_v16 = vmax.f32 %v519_v11, 0.0  ;;  %v598_v17 = vmax.f32 %v572_v12, 0.0  ;;  %1105 = vmatpush2.bf16.msra.mxu1 %v1945_v31 }
 0x145   :  { %843 = vmatprep.mubr.bf16.mxu0 %v616_v13  ;;  %v612_v22 = vadd.f32 %v604_v10, %v588_v9  ;;  %1106 = vmatprep.subr.bf16.mxu1 %v1951_v32 }
 0x146   :  { %v590_v20 = vmin.f32 %v582_v16, 1.0  ;;  %v606_v21 = vmin.f32 %v598_v17, 1.0  ;;  %844 = vmatmul.mubr.bf16.vlgmr.msra.gmra.mxu0 %v615_v8  ;;  %v613_v23 = vadd.f32 %v605_v15, %v589_v14 }
 0x147   :  { %1158 = vmatpush1.bf16.msra.mxu0 %v1831_v44 }
 0x148   :  { %v614_v24 = vadd.f32 %v606_v21, %v590_v20  ;;  %1159 = vmatprep.subr.bf16.mxu0 %v1835_v46  ;;  %v617_v27 = vpack.c.bf16 %v613_v23, %v611_v25  ;;  %1107 = vmatpush2.bf16.msra.mxu1 %v1953_v33 }
 0x149   :  { %1238 = vmatprep.subr.bf16.mxu1 %v1833_v45 }
 0x14a   :  { %v618_v26 = vpack.c.bf16 %v614_v24, %v612_v22 }
 0x14b   :  { %1160 = vmatpush1.bf16.msra.mxu0 %v1840_v47 }
 0x14c   :  { %853 = vmatprep.mubr.bf16.mxu0 %v618_v26  ;;  %1161 = vmatprep.subr.bf16.mxu0 %v1843_v48 }
 0x14e   :  { %854 = vmatmul.mubr.bf16.gmra.mxu0 %v617_v27 }
 0x14f   :  { %1162 = vmatpush1.bf16.msra.mxu0 %v1846_v49 }
 0x150   :  { %1163 = vmatprep.subr.bf16.mxu0 %v1849_v50 }
 0x153   :  { %1164 = vmatpush1.bf16.msra.mxu0 %v1852_v51 }
 0x154   :  { %1165 = vmatprep.subr.bf16.mxu0 %v1855_v52 }
 0x157   :  { %1166 = vmatpush1.bf16.msra.mxu0 %v1858_v53 }
 0x158   :  { %1167 = vmatprep.subr.bf16.mxu0 %v1861_v54 }
 0x15b   :  { %1168 = vmatpush1.bf16.msra.mxu0 %v1864_v55 }
 0x15c   :  { %1169 = vmatprep.subr.bf16.mxu0 %v1867_v56 }
 0x15f   :  { %1170 = vmatpush1.bf16.msra.mxu0 %v1870_v57 }
 0x160   :  { %1171 = vmatprep.subr.bf16.mxu0 %v1873_v58 }
 0x163   :  { %1172 = vmatpush1.bf16.msra.mxu0 %v1876_v59 }
 0x164   :  { %1173 = vmatprep.subr.bf16.mxu0 %v1879_v60 }
 0x167   :  { %1174 = vmatpush2.bf16.msra.mxu0 %v1882_v61 }
 0x168   :  { %1175 = vmatprep.subr.bf16.mxu0 %v1885_v62 }
 0x16b   :  { %1176 = vmatpush2.bf16.msra.mxu0 %v1888_v63 }
 0x16c   :  { %1177 = vmatprep.subr.bf16.mxu0 %v1891_v0 }
 0x16f   :  { %1178 = vmatpush2.bf16.msra.mxu0 %v1894_v1 }
 0x170   :  { %1179 = vmatprep.subr.bf16.mxu0 %v1897_v2 }
 0x173   :  { %1180 = vmatpush2.bf16.msra.mxu0 %v1900_v3 }
 0x174   :  { %1181 = vmatprep.subr.bf16.mxu0 %v1903_v4 }
 0x177   :  { %1182 = vmatpush2.bf16.msra.mxu0 %v1906_v5 }
 0x178   :  { %1183 = vmatprep.subr.bf16.mxu0 %v1935_v28 }
 0x17b   :  { %1184 = vmatpush2.bf16.msra.mxu0 %v1937_v29 }
 0x17c   :  { %1185 = vmatprep.subr.bf16.mxu0 %v1943_v30 }
 0x17f   :  { %1186 = vmatpush2.bf16.msra.mxu0 %v1945_v31 }
 0x180   :  { %1187 = vmatprep.subr.bf16.mxu0 %v1951_v32 }
 0x183   :  { %1188 = vmatpush2.bf16.msra.mxu0 %v1953_v33 }
 0x206   :  { %v1960_v34 = vpop.f32.mrf.mxu0 }
 0x207   :  { %v864_v39 = vmax.f32 %v1960_v34, 0.0 }
 0x208   :  { %v1962_v35 = vpop.f32.mrf.mxu0 }
 0x209   :  { %v865_v37 = vmax.f32 %v1962_v35, 0.0  ;;  %v872_v7 = vmin.f32 %v864_v39, 1.0 }
 0x20a   :  { %v1964_v36 = vpop.f32.mrf.mxu0 }
 0x20b   :  { %v866_v38 = vmax.f32 %v1964_v36, 0.0  ;;  %v873_v45 = vmin.f32 %v865_v37, 1.0 }
 0x20c   :  { %v1969_v40 = vpop.f32.mrf.mxu0 }
 0x20d   :  { %v867_v41 = vmax.f32 %v1969_v40, 0.0  ;;  %v874_v42 = vmin.f32 %v866_v38, 1.0 }
 0x20e   :  { %v1972_v43 = vpop.f32.mrf.mxu0 }
 0x20f   :  { %v875_v6 = vmin.f32 %v867_v41, 1.0  ;;  %v880_v10 = vpack.c.bf16 %v874_v42, %v872_v7  ;;  %v868_v14 = vmax.f32 %v1972_v43, 0.0 }
 0x210   :  { %v1974_v8 = vpop.f32.mrf.mxu0 }
 0x211   :  { %v881_v9 = vpack.c.bf16 %v875_v6, %v873_v45  ;;  %v869_v12 = vmax.f32 %v1974_v8, 0.0  ;;  %v876_v20 = vmin.f32 %v868_v14, 1.0 }
 0x212   :  { %v1976_v11 = vpop.f32.mrf.mxu0 }
 0x213   :  { %v870_v13 = vmax.f32 %v1976_v11, 0.0  ;;  %1108 = vmatprep.mubr.bf16.mxu1 %v881_v9  ;;  %v877_v18 = vmin.f32 %v869_v12, 1.0 }
 0x214   :  { %v1981_v15 = vpop.f32.mrf.mxu0  ;;  %1109 = vmatmul.mubr.bf16.vlgmr.msra.gmra.mxu1 %v880_v10 }
 0x215   :  { %v871_v16 = vmax.f32 %v1981_v15, 0.0  ;;  %1239 = vmatpush1.bf16.msra.mxu1 %v1831_v44  ;;  %v878_v17 = vmin.f32 %v870_v13, 1.0 }
 0x216   :  { %1240 = vmatprep.subr.bf16.mxu1 %v1835_v46 }
 0x217   :  { %v879_v19 = vmin.f32 %v871_v16, 1.0  ;;  %v882_v22 = vpack.c.bf16 %v878_v17, %v876_v20 }
 0x219   :  { %v883_v21 = vpack.c.bf16 %v879_v19, %v877_v18  ;;  %1241 = vmatpush1.bf16.msra.mxu1 %v1840_v47 }
 0x21a   :  { %1242 = vmatprep.subr.bf16.mxu1 %v1843_v48 }
 0x21b   :  { %1118 = vmatprep.mubr.bf16.mxu1 %v883_v21 }
 0x21c   :  { %1119 = vmatmul.mubr.bf16.gmra.mxu1 %v882_v22 }
 0x21d   :  { %1243 = vmatpush1.bf16.msra.mxu1 %v1846_v49 }
 0x21e   :  { %1244 = vmatprep.subr.bf16.mxu1 %v1849_v50 }
 0x221   :  { %1245 = vmatpush1.bf16.msra.mxu1 %v1852_v51 }
 0x222   :  { %1246 = vmatprep.subr.bf16.mxu1 %v1855_v52 }
 0x225   :  { %1247 = vmatpush1.bf16.msra.mxu1 %v1858_v53 }
 0x226   :  { %1248 = vmatprep.subr.bf16.mxu1 %v1861_v54 }
 0x229   :  { %1249 = vmatpush1.bf16.msra.mxu1 %v1864_v55 }
 0x22a   :  { %1250 = vmatprep.subr.bf16.mxu1 %v1867_v56 }
 0x22d   :  { %1251 = vmatpush1.bf16.msra.mxu1 %v1870_v57 }
 0x22e   :  { %1252 = vmatprep.subr.bf16.mxu1 %v1873_v58 }
 0x231   :  { %1253 = vmatpush1.bf16.msra.mxu1 %v1876_v59 }
 0x232   :  { %1254 = vmatprep.subr.bf16.mxu1 %v1879_v60 }
 0x235   :  { %1255 = vmatpush2.bf16.msra.mxu1 %v1882_v61 }
 0x236   :  { %1256 = vmatprep.subr.bf16.mxu1 %v1885_v62 }
 0x239   :  { %1257 = vmatpush2.bf16.msra.mxu1 %v1888_v63 }
 0x23a   :  { %1258 = vmatprep.subr.bf16.mxu1 %v1891_v0 }
 0x23d   :  { %1259 = vmatpush2.bf16.msra.mxu1 %v1894_v1 }
 0x23e   :  { %1260 = vmatprep.subr.bf16.mxu1 %v1897_v2 }
 0x241   :  { %1261 = vmatpush2.bf16.msra.mxu1 %v1900_v3 }
 0x242   :  { %1262 = vmatprep.subr.bf16.mxu1 %v1903_v4 }
 0x245   :  { %1263 = vmatpush2.bf16.msra.mxu1 %v1906_v5 }
 0x246   :  { %1264 = vmatprep.subr.bf16.mxu1 %v1935_v28 }
 0x249   :  { %1265 = vmatpush2.bf16.msra.mxu1 %v1937_v29 }
 0x24a   :  { %1266 = vmatprep.subr.bf16.mxu1 %v1943_v30 }
 0x24d   :  { %1267 = vmatpush2.bf16.msra.mxu1 %v1945_v31 }
 0x24e   :  { %1268 = vmatprep.subr.bf16.mxu1 %v1951_v32 }
 0x251   :  { %1269 = vmatpush2.bf16.msra.mxu1 %v1953_v33 }
 0x2d4   :  { %v1110_v44 = vpop.f32.mrf.mxu1 }
 0x2d5   :  { %v1129_v48 = vadd.f32 %v1110_v44, %v1960_v34 }
 0x2d6   :  { %v1112_v46 = vpop.f32.mrf.mxu1 }
 0x2d7   :  { %v1130_v47 = vadd.f32 %v1112_v46, %v1962_v35  ;;  %v1137_v55 = vmax.f32 %v1129_v48, 0.0 }
 0x2d8   :  { %v1114_v49 = vpop.f32.mrf.mxu1 }
 0x2d9   :  { %v1131_v50 = vadd.f32 %v1114_v49, %v1964_v36  ;;  %v1138_v52 = vmax.f32 %v1130_v47, 0.0  ;;  %v1145_v63 = vmin.f32 %v1137_v55, 1.0 }
 0x2da   :  { %v1116_v51 = vpop.f32.mrf.mxu1 }
 0x2db   :  { %v1139_v53 = vmax.f32 %v1131_v50, 0.0  ;;  %v1132_v54 = vadd.f32 %v1116_v51, %v1969_v40  ;;  %v1146_v60 = vmin.f32 %v1138_v52, 1.0 }
 0x2dc   :  { %v1120_v56 = vpop.f32.mrf.mxu1 }
 0x2dd   :  { %v1140_v57 = vmax.f32 %v1132_v54, 0.0  ;;  %v1147_v58 = vmin.f32 %v1139_v53, 1.0  ;;  %v1133_v0 = vadd.f32 %v1120_v56, %v1972_v43 }
 0x2de   :  { %v1122_v59 = vpop.f32.mrf.mxu1 }
 0x2df   :  { %v1148_v61 = vmin.f32 %v1140_v57, 1.0  ;;  %v1134_v62 = vadd.f32 %v1122_v59, %v1974_v8  ;;  %v1153_v4 = vpack.c.bf16 %v1147_v58, %v1145_v63  ;;  %v1141_v26 = vmax.f32 %v1133_v0, 0.0 }
 0x2e0   :  { %v1124_v1 = vpop.f32.mrf.mxu1 }
 0x2e1   :  { %v1154_v2 = vpack.c.bf16 %v1148_v61, %v1146_v60  ;;  %v1135_v3 = vadd.f32 %v1124_v1, %v1976_v11  ;;  %v1142_v23 = vmax.f32 %v1134_v62, 0.0  ;;  %v1149_v31 = vmin.f32 %v1141_v26, 1.0 }
 0x2e2   :  { %v1126_v5 = vpop.f32.mrf.mxu1 }
 0x2e3   :  { %v1143_v24 = vmax.f32 %v1135_v3, 0.0  ;;  %v1136_v25 = vadd.f32 %v1126_v5, %v1981_v15  ;;  %1189 = vmatprep.mubr.bf16.mxu0 %v1154_v2  ;;  %v1150_v29 = vmin.f32 %v1142_v23, 1.0 }
 0x2e4   :  { %1190 = vmatmul.mubr.bf16.vlgmr.msra.gmra.mxu0 %v1153_v4 }
 0x2e5   :  { %v1144_v27 = vmax.f32 %v1136_v25, 0.0  ;;  %v1151_v28 = vmin.f32 %v1143_v24, 1.0 }
 0x2e7   :  { %v1152_v30 = vmin.f32 %v1144_v27, 1.0  ;;  %v1155_v33 = vpack.c.bf16 %v1151_v28, %v1149_v31 }
 0x2e9   :  { %v1156_v32 = vpack.c.bf16 %v1152_v30, %v1150_v29 }
 0x2eb   :  { %1199 = vmatprep.mubr.bf16.mxu0 %v1156_v32 }
 0x2ec   :  { %1200 = vmatmul.mubr.bf16.gmra.mxu0 %v1155_v33 }
 0x3a4   :  { %v1191_v37 = vpop.f32.mrf.mxu0 }
 0x3a5   :  { %v1210_v41 = vadd.f32 %v1191_v37, %v1960_v34 }
 0x3a6   :  { %v1193_v38 = vpop.f32.mrf.mxu0 }
 0x3a7   :  { %v1211_v39 = vadd.f32 %v1193_v38, %v1962_v35  ;;  %v1218_v12 = vmax.f32 %v1210_v41, 0.0 }
 0x3a8   :  { %v1195_v42 = vpop.f32.mrf.mxu0 }
 0x3a9   :  { %v1212_v45 = vadd.f32 %v1195_v42, %v1964_v36  ;;  %v1219_v7 = vmax.f32 %v1211_v39, 0.0  ;;  %v1226_v21 = vmin.f32 %v1218_v12, 1.0 }
 0x3aa   :  { %v1197_v6 = vpop.f32.mrf.mxu0 }
 0x3ab   :  { %v1220_v9 = vmax.f32 %v1212_v45, 0.0  ;;  %v1213_v10 = vadd.f32 %v1197_v6, %v1969_v40  ;;  %v1227_v18 = vmin.f32 %v1219_v7, 1.0 }
 0x3ac   :  { %v1201_v13 = vpop.f32.mrf.mxu0 }
 0x3ad   :  { %v1221_v14 = vmax.f32 %v1213_v10, 0.0  ;;  %v1228_v16 = vmin.f32 %v1220_v9, 1.0  ;;  %v1214_v22 = vadd.f32 %v1201_v13, %v1972_v43 }
 0x3ae   :  { %v1203_v17 = vpop.f32.mrf.mxu0 }
 0x3af   :  { %v1229_v19 = vmin.f32 %v1221_v14, 1.0  ;;  %v1215_v20 = vadd.f32 %v1203_v17, %v1974_v8  ;;  %v1234_v48 = vpack.c.bf16 %v1228_v16, %v1226_v21  ;;  %v1222_v53 = vmax.f32 %v1214_v22, 0.0 }
 0x3b0   :  { %v1205_v44 = vpop.f32.mrf.mxu0 }
 0x3b1   :  { %v1235_v46 = vpack.c.bf16 %v1229_v19, %v1227_v18  ;;  %v1216_v47 = vadd.f32 %v1205_v44, %v1976_v11  ;;  %v1223_v50 = vmax.f32 %v1215_v20, 0.0  ;;  %v1230_v58 = vmin.f32 %v1222_v53, 1.0 }
 0x3b2   :  { %v1207_v49 = vpop.f32.mrf.mxu0 }
 0x3b3   :  { %v1224_v51 = vmax.f32 %v1216_v47, 0.0  ;;  %v1217_v52 = vadd.f32 %v1207_v49, %v1981_v15  ;;  %1270 = vmatprep.mubr.bf16.mxu1 %v1235_v46  ;;  %v1231_v56 = vmin.f32 %v1223_v50, 1.0 }
 0x3b4   :  { %1271 = vmatmul.mubr.bf16.vlgmr.msra.gmra.mxu1 %v1234_v48 }
 0x3b5   :  { %v1225_v54 = vmax.f32 %v1217_v52, 0.0  ;;  %v1232_v55 = vmin.f32 %v1224_v51, 1.0 }
 0x3b7   :  { %v1233_v57 = vmin.f32 %v1225_v54, 1.0  ;;  %v1236_v60 = vpack.c.bf16 %v1232_v55, %v1230_v58 }
 0x3b9   :  { %v1237_v59 = vpack.c.bf16 %v1233_v57, %v1231_v56 }
 0x3bb   :  { %1280 = vmatprep.mubr.bf16.mxu1 %v1237_v59 }
 0x3bc   :  { %1281 = vmatmul.mubr.bf16.gmra.mxu1 %v1236_v60 }
 0x474   :  { %v1272_v61 = vpop.f32.mrf.mxu1 }
 0x475   :  { %v1291_v62 = vadd.f32 %v1272_v61, %v1960_v34 }
 0x476   :  { %v1274_v63 = vpop.f32.mrf.mxu1 }
 0x477   :  { %v1299_v0 = vmax.f32 %v1291_v62, 0.0  ;;  %v1292_v1 = vadd.f32 %v1274_v63, %v1962_v35 }
 0x478   :  { %v1276_v2 = vpop.f32.mrf.mxu1 }
 0x479   :  { %v1307_v3 = vmin.f32 %v1299_v0, 1.0  ;;  %v1300_v4 = vmax.f32 %v1292_v1, 0.0  ;;  %v1293_v5 = vadd.f32 %v1276_v2, %v1964_v36 }
 0x47a   :  { %v1278_v23 = vpop.f32.mrf.mxu1 }
 0x47b   :  { %1315 = vst [vmem:[#allocation10] sm:$0xff] %v1307_v3  ;;  %v1308_v24 = vmin.f32 %v1300_v4, 1.0  ;;  %v1301_v25 = vmax.f32 %v1293_v5, 0.0  ;;  %v1294_v26 = vadd.f32 %v1278_v23, %v1969_v40 }
 0x47c   :  { %v1282_v27 = vpop.f32.mrf.mxu1 }
 0x47d   :  { %1316 = vst [vmem:[#allocation10 + $0x8] sm:$0xff] %v1308_v24  ;;  %v1309_v28 = vmin.f32 %v1301_v25, 1.0  ;;  %v1302_v29 = vmax.f32 %v1294_v26, 0.0  ;;  %v1295_v34 = vadd.f32 %v1282_v27, %v1972_v43 }
 0x47e   :  { %v1284_v30 = vpop.f32.mrf.mxu1 }
 0x47f   :  { %1317 = vst [vmem:[#allocation10 + $0x10] sm:$0xff] %v1309_v28  ;;  %v1310_v35 = vmin.f32 %v1302_v29, 1.0  ;;  %v1303_v31 = vmax.f32 %v1295_v34, 0.0  ;;  %v1296_v32 = vadd.f32 %v1284_v30, %v1974_v8 }
 0x480   :  { %v1286_v33 = vpop.f32.mrf.mxu1 }
 0x481   :  { %1318 = vst [vmem:[#allocation10 + $0x18] sm:$0xff] %v1310_v35  ;;  %v1311_v36 = vmin.f32 %v1303_v31, 1.0  ;;  %v1304_v37 = vmax.f32 %v1296_v32, 0.0  ;;  %v1297_v38 = vadd.f32 %v1286_v33, %v1976_v11 }
 0x482   :  { %v1288_v39 = vpop.f32.mrf.mxu1 }
 0x483   :  { %1319 = vst [vmem:[#allocation10 + $0x20] sm:$0xff] %v1311_v36  ;;  %v1312_v40 = vmin.f32 %v1304_v37, 1.0  ;;  %v1305_v41 = vmax.f32 %v1297_v38, 0.0  ;;  %v1298_v42 = vadd.f32 %v1288_v39, %v1981_v15 }
 0x485   :  { %1320 = vst [vmem:[#allocation10 + $0x28] sm:$0xff] %v1312_v40  ;;  %v1313_v43 = vmin.f32 %v1305_v41, 1.0  ;;  %v1306_v45 = vmax.f32 %v1298_v42, 0.0 }
 0x487   :  { %1321 = vst [vmem:[#allocation10 + $0x30] sm:$0xff] %v1313_v43  ;;  %v1314_v6 = vmin.f32 %v1306_v45, 1.0 }
 0x489   :  { %1322 = vst [vmem:[#allocation10 + $0x38] sm:$0xff] %v1314_v6 }
 0x48a   :  { %1762 = shalt.err (!%p1759_p10)
}
 0x48b   :  { %1334 = dma.vmem_to_hbm [thread:$0]  %s1329_s3, 1024, %s2049_s4, [#allocation4], %s1781_s20, %s1781_s20, %s1782_s21  }
 0x48c   :  { %1777 = dma.done.wait [#allocation4], 1024  }
 0x48d   :  { %1778 = vsyncadd [#allocation4], 4294966272 }
 0x48e   :  { %1338 = vsyncpa [#allocation3], 1 }
 0x48f   :  { %1339 = vsyncpa [#allocation6], 1 }
 0x490   :  { %1340 = vsyncpa [#allocation9], 1 }
 0x491   :  { %1341 = vsyncpa [#allocation4], 1 }

</bundles_post_ra>
